<compile_context>
chip_gen: v6e
topology: v6e:2x2x1
jax: 0.10.0
libtpu: 0.0.40
codegen_flags: <defaults>
</compile_context>

<pallas_src>
import math
from functools import partial

import jax
import jax.numpy as jnp
from jax.experimental import pallas as pl
from jax.experimental.pallas import tpu as pltpu


# Row indices of the packed (12, P) bias / LayerNorm parameter operand.
_SA_BQKV, _SA_BO, _LN1_G, _LN1_B = 0, 1, 2, 3
_CA_BQKV, _CA_BO, _LN2_G, _LN2_B = 4, 5, 6, 7
_FFN_B1, _FFN_B2, _LN3_G, _LN3_B = 8, 9, 10, 11
_VEC_ROWS = ('sa_bqkv', 'sa_bo', 'ln1_g', 'ln1_b',
             'ca_bqkv', 'ca_bo', 'ln2_g', 'ln2_b',
             'ffn_b1', 'ffn_b2', 'ln3_g', 'ln3_b')


# ----------------------------- fused kernel --------------------------------

def _fused_decoder_layer_kernel(
        x_ref, mem_ref,
        sa_wqkv_ref, sa_wo_ref,
        ca_wqkv_ref, ca_wo_ref,
        ffn_w1_ref, ffn_w2_ref,
        vec_ref,
        out_ref,
        attn_scratch,
        *, bs, Lq, Lk, num_heads, eps):
    E = x_ref.shape[-1]
    F = ffn_w1_ref.shape[-1]
    Dh = E // num_heads
    scale = 1.0 / math.sqrt(Dh)

    vec = vec_ref[...]                       # (12, P) f32 — single DMA stream

    def vrow(i, n, off=0):                   # (1, n) static slice of packed row i
        return vec[i:i + 1, off:off + n]

    def layer_norm(x, gi, bi):               # x: (bs*Lq, E) f32
        mean = jnp.mean(x, axis=-1, keepdims=True)
        xc = x - mean
        var = jnp.mean(xc * xc, axis=-1, keepdims=True)
        return xc * jax.lax.rsqrt(var + eps) * vrow(gi, E) + vrow(bi, E)

    def mha(q, k, v, wo, bo, kv_len):
        # q: (bs*Lq, E) bf16, k/v: (bs*kv_len, E) bf16, wo: (E, E) bf16,
        # bo: (1, E) f32.  Head column slices are done ONCE per head (hoisted
        # out of the batch loop) on bf16 data; per-batch slicing is on rows
        # (sublane-aligned, Lq/Lk multiples of 8); the per-head context is
        # folded straight into the output projection via sublane-aligned row
        # blocks of wo (== concat(heads) @ wo, without a lane-axis concat).
        accs = [None] * bs
        for h in range(num_heads):
            c = slice(h * Dh, (h + 1) * Dh)
            qh, kh, vh, woh = q[:, c], k[:, c], v[:, c], wo[c, :]
            for b in range(bs):
                rq = slice(b * Lq, (b + 1) * Lq)
                rk = slice(b * kv_len, (b + 1) * kv_len)
                # scores = qh @ kh.T  (NT matmul, f32 accumulation on the MXU)
                s = jax.lax.dot_general(
                    qh[rq], kh[rk], (((1,), (1,)), ((), ())),
                    preferred_element_type=jnp.float32) * scale
                s = s - jnp.max(s, axis=-1, keepdims=True)
                p = jnp.exp(s)
                p = p * pl.reciprocal(jnp.sum(p, axis=-1, keepdims=True),
                                      approx=True)
                ctx = jnp.dot(p.astype(jnp.bfloat16), vh[rk],
                              preferred_element_type=jnp.float32)
                part = jnp.dot(ctx.astype(jnp.bfloat16), woh,
                               preferred_element_type=jnp.float32)
                accs[b] = part if accs[b] is None else accs[b] + part
        # assemble per-batch rows through a small VMEM scratch (sublane-aligned
        # static row stores), then read back the full (bs*Lq, E) block.
        for b in range(bs):
            attn_scratch[b * Lq:(b + 1) * Lq, :] = accs[b]
        return attn_scratch[...] + bo

    # Residual stream stays f32; all matmul operands are bf16 with f32 accum.
    x = x_ref[...].astype(jnp.float32)                        # (bs*Lq, E)

    # ---- self-attention: one fused (bs*Lq, 3E) QKV projection ----
    qkv = (jnp.dot(x.astype(jnp.bfloat16), sa_wqkv_ref[...],
                   preferred_element_type=jnp.float32)
           + vrow(_SA_BQKV, 3 * E)).astype(jnp.bfloat16)
    sa = mha(qkv[:, :E], qkv[:, E:2 * E], qkv[:, 2 * E:],
             sa_wo_ref[...], vrow(_SA_BO, E), Lq)
    x = layer_norm(x + sa, _LN1_G, _LN1_B)

    # ---- cross-attention: q from decoder stream, fused (bs*Lk, 2E) KV ----
    ca_wqkv = ca_wqkv_ref[...]                                # (E, 3E) bf16
    qx = (jnp.dot(x.astype(jnp.bfloat16), ca_wqkv[:, :E],
                  preferred_element_type=jnp.float32)
          + vrow(_CA_BQKV, E)).astype(jnp.bfloat16)
    kv = (jnp.dot(mem_ref[...], ca_wqkv[:, E:],               # memory is bf16
                  preferred_element_type=jnp.float32)
          + vrow(_CA_BQKV, 2 * E, E)).astype(jnp.bfloat16)
    ca = mha(qx, kv[:, :E], kv[:, E:], ca_wo_ref[...], vrow(_CA_BO, E), Lk)
    x = layer_norm(x + ca, _LN2_G, _LN2_B)

    # ---- FFN: hidden stays bf16 and never leaves VMEM ----
    h = jnp.maximum(
        jnp.dot(x.astype(jnp.bfloat16), ffn_w1_ref[...],
                preferred_element_type=jnp.float32) + vrow(_FFN_B1, F),
        0.0).astype(jnp.bfloat16)
    y = jnp.dot(h, ffn_w2_ref[...],
                preferred_element_type=jnp.float32) + vrow(_FFN_B2, E)
    x = layer_norm(x + y, _LN3_G, _LN3_B)

    out_ref[...] = x.astype(out_ref.dtype)


# ------------------------------ wrapper -------------------------------------

def transformer_decoder_layer_without_pos(query, memory, reference_points,
                                          valid_ratios, params, num_heads=4,
                                          eps=1e-5):
    bs, Lq, E = query.shape
    Lk = memory.shape[1]
    F = params['ffn_w1'].shape[1]

    # ---- the module's own forward compute: reference-point scaling ----
    # Plain JAX broadcast-multiply in the wrapper (lane-sparse d=2/4 output
    # does not belong in the kernel).
    d = reference_points.shape[-1]
    if d == 4:
        vr = jnp.concatenate([valid_ratios, valid_ratios], axis=-1)
    else:
        assert d == 2
        vr = valid_ratios
    reference_points_input = reference_points[:, :, None, :] * vr[:, None, :, :]

    # ---- pack the 12 small bias / LayerNorm vectors into one operand ----
    max_len = max(int(params[n].shape[0]) for n in _VEC_ROWS)
    P = ((max_len + 127) // 128) * 128
    vec = jnp.stack(
        [jnp.pad(params[n].astype(jnp.float32),
                 (0, P - int(params[n].shape[0]))) for n in _VEC_ROWS], axis=0)

    # Fold batch into rows for projections / FFN / LayerNorm; memory only feeds
    # a bf16 matmul, so send it as bf16 (halves its DMA bytes).
    x2d = query.reshape(bs * Lq, E)
    mem2d = memory.reshape(bs * Lk, E).astype(jnp.bfloat16)

    out2d = pl.pallas_call(
        partial(_fused_decoder_layer_kernel, bs=bs, Lq=Lq, Lk=Lk,
                num_heads=num_heads, eps=eps),
        out_shape=jax.ShapeDtypeStruct((bs * Lq, E), query.dtype),
        scratch_shapes=[pltpu.VMEM((bs * Lq, E), jnp.float32)],
        compiler_params=pltpu.CompilerParams(
            vmem_limit_bytes=32 * 1024 * 1024),
    )(x2d, mem2d,
      params['sa_wqkv'], params['sa_wo'],
      params['ca_wqkv'], params['ca_wo'],
      params['ffn_w1'], params['ffn_w2'],
      vec)

    # The torch module returns only `output`; reference_points_input is also
    # returned so the module's own scaling compute is exercised and verifiable.
    return out2d.reshape(bs, Lq, E), reference_points_input


# ------------------------------ param init ----------------------------------

def _xavier(key, shape, dtype=jnp.float32):
    fan_in, fan_out = shape
    limit = math.sqrt(6.0 / (fan_in + fan_out))
    return jax.random.uniform(key, shape, jnp.float32, -limit, limit).astype(dtype)


def init_params(key, E, F):
    ks = jax.random.split(key, 6)
    wdt = jnp.bfloat16   # matmul weights stored bf16; biases / LN params f32
    return dict(
        sa_wqkv=_xavier(ks[0], (E, 3 * E), wdt),
        sa_bqkv=jnp.zeros((3 * E,), jnp.float32),
        sa_wo=_xavier(ks[1], (E, E), wdt),
        sa_bo=jnp.zeros((E,), jnp.float32),
        ca_wqkv=_xavier(ks[2], (E, 3 * E), wdt),
        ca_bqkv=jnp.zeros((3 * E,), jnp.float32),
        ca_wo=_xavier(ks[3], (E, E), wdt),
        ca_bo=jnp.zeros((E,), jnp.float32),
        ffn_w1=_xavier(ks[4], (E, F), wdt),
        ffn_b1=jnp.zeros((F,), jnp.float32),
        ffn_w2=_xavier(ks[5], (F, E), wdt),
        ffn_b2=jnp.zeros((E,), jnp.float32),
        ln1_g=jnp.ones((E,), jnp.float32), ln1_b=jnp.zeros((E,), jnp.float32),
        ln2_g=jnp.ones((E,), jnp.float32), ln2_b=jnp.zeros((E,), jnp.float32),
        ln3_g=jnp.ones((E,), jnp.float32), ln3_b=jnp.zeros((E,), jnp.float32),
    )


# --------------------------------- main --------------------------------------

if __name__ == "__main__":
    bs, nq, Lk, E, H, F, nl = 2, 8, 16, 32, 4, 64, 2

    key = jax.random.PRNGKey(0)
    k1, k2, k3, k4 = jax.random.split(key, 4)
    query = jax.random.normal(k1, (bs, nq, E), jnp.float32)
    memory = jax.random.normal(k2, (bs, Lk, E), jnp.float32)
    reference_points = jax.random.uniform(k3, (bs, nq, 2), jnp.float32)
    valid_ratios = jax.random.uniform(k4, (bs, nl, 2), jnp.float32,
                                      minval=0.5, maxval=1.0)

    params = init_params(jax.random.PRNGKey(42), E, F)

    out, ref_pts_in = transformer_decoder_layer_without_pos(
        query, memory, reference_points, valid_ratios, params, num_heads=H)

    out, ref_pts_in = jax.block_until_ready((out, ref_pts_in))
    assert out.shape == (bs, nq, E)
    assert ref_pts_in.shape == (bs, nq, nl, 2)
    assert bool(jnp.all(jnp.isfinite(out)))
    assert bool(jnp.all(jnp.isfinite(ref_pts_in)))
    print("KERNEL_OK")
</pallas_src>

<mosaic_0001>
module attributes {stable_mosaic.version = 11 : i64} {
  func.func @_fused_decoder_layer_kernel(%arg0: memref<16x32xf32, #tpu.memory_space<vmem>>, %arg1: memref<32x32xbf16, #tpu.memory_space<vmem>>, %arg2: memref<32x96xbf16, #tpu.memory_space<vmem>>, %arg3: memref<32x32xbf16, #tpu.memory_space<vmem>>, %arg4: memref<32x96xbf16, #tpu.memory_space<vmem>>, %arg5: memref<32x32xbf16, #tpu.memory_space<vmem>>, %arg6: memref<32x64xbf16, #tpu.memory_space<vmem>>, %arg7: memref<64x32xbf16, #tpu.memory_space<vmem>>, %arg8: memref<12x128xf32, #tpu.memory_space<vmem>>, %arg9: memref<16x32xf32, #tpu.memory_space<vmem>>, %arg10: memref<16x32xf32, #tpu.memory_space<vmem>>) attributes {dimension_semantics = [], scalar_prefetch = 0 : i64, scratch_operands = 1 : i64, tpu.core_type = #tpu.core_type<tc>} {
    %c0 = arith.constant 0 : index
    %c0_0 = arith.constant 0 : index
    %0 = vector.load %arg8[%c0, %c0_0] : memref<12x128xf32, #tpu.memory_space<vmem>>, vector<12x128xf32>
    %c0_1 = arith.constant 0 : index
    %c0_2 = arith.constant 0 : index
    %1 = vector.load %arg0[%c0_1, %c0_2] : memref<16x32xf32, #tpu.memory_space<vmem>>, vector<16x32xf32>
    %2 = arith.truncf %1 : vector<16x32xf32> to vector<16x32xbf16>
    %c0_3 = arith.constant 0 : index
    %c0_4 = arith.constant 0 : index
    %3 = vector.load %arg2[%c0_3, %c0_4] : memref<32x96xbf16, #tpu.memory_space<vmem>>, vector<32x96xbf16>
    %cst = arith.constant dense<0.000000e+00> : vector<16x96xf32>
    %4 = tpu.matmul %2, %3, %cst {dimension_numbers = #tpu.dot_dimension_numbers<[1], [0], [0], [1], [0, 0, 1, 1], [], []>} : vector<16x32xbf16>, vector<32x96xbf16>, vector<16x96xf32> -> vector<16x96xf32>
    %5 = vector.extract_strided_slice %0 {offsets = [0, 0], sizes = [1, 96], strides = [1, 1]} : vector<12x128xf32> to vector<1x96xf32>
    %6 = vector.broadcast %5 : vector<1x96xf32> to vector<16x96xf32>
    %7 = arith.addf %4, %6 : vector<16x96xf32>
    %8 = arith.truncf %7 : vector<16x96xf32> to vector<16x96xbf16>
    %9 = vector.extract_strided_slice %8 {offsets = [0, 0], sizes = [16, 32], strides = [1, 1]} : vector<16x96xbf16> to vector<16x32xbf16>
    %10 = vector.extract_strided_slice %8 {offsets = [0, 32], sizes = [16, 32], strides = [1, 1]} : vector<16x96xbf16> to vector<16x32xbf16>
    %11 = vector.extract_strided_slice %8 {offsets = [0, 64], sizes = [16, 32], strides = [1, 1]} : vector<16x96xbf16> to vector<16x32xbf16>
    %c0_5 = arith.constant 0 : index
    %c0_6 = arith.constant 0 : index
    %12 = vector.load %arg3[%c0_5, %c0_6] : memref<32x32xbf16, #tpu.memory_space<vmem>>, vector<32x32xbf16>
    %13 = vector.extract_strided_slice %0 {offsets = [1, 0], sizes = [1, 32], strides = [1, 1]} : vector<12x128xf32> to vector<1x32xf32>
    %14 = vector.extract_strided_slice %9 {offsets = [0, 0], sizes = [16, 8], strides = [1, 1]} : vector<16x32xbf16> to vector<16x8xbf16>
    %15 = vector.extract_strided_slice %10 {offsets = [0, 0], sizes = [16, 8], strides = [1, 1]} : vector<16x32xbf16> to vector<16x8xbf16>
    %16 = vector.extract_strided_slice %11 {offsets = [0, 0], sizes = [16, 8], strides = [1, 1]} : vector<16x32xbf16> to vector<16x8xbf16>
    %17 = vector.extract_strided_slice %12 {offsets = [0, 0], sizes = [8, 32], strides = [1, 1]} : vector<32x32xbf16> to vector<8x32xbf16>
    %18 = vector.extract_strided_slice %14 {offsets = [0, 0], sizes = [8, 8], strides = [1, 1]} : vector<16x8xbf16> to vector<8x8xbf16>
    %19 = vector.extract_strided_slice %15 {offsets = [0, 0], sizes = [8, 8], strides = [1, 1]} : vector<16x8xbf16> to vector<8x8xbf16>
    %cst_7 = arith.constant dense<0.000000e+00> : vector<8x8xf32>
    %20 = tpu.matmul %18, %19, %cst_7 {dimension_numbers = #tpu.dot_dimension_numbers<[1], [1], [0], [0], [0, 0, 1, 0], [], []>} : vector<8x8xbf16>, vector<8x8xbf16>, vector<8x8xf32> -> vector<8x8xf32>
    %cst_8 = arith.constant 0.353553385 : f32
    %21 = vector.broadcast %cst_8 : f32 to vector<8x8xf32>
    %22 = arith.mulf %20, %21 : vector<8x8xf32>
    %cst_9 = arith.constant dense<0xFF800000> : vector<8xf32>
    %23 = vector.multi_reduction <maximumf>, %22, %cst_9 [1] : vector<8x8xf32> to vector<8xf32>
    %24 = vector.shape_cast %23 : vector<8xf32> to vector<8x1xf32>
    %25 = vector.broadcast %24 : vector<8x1xf32> to vector<8x8xf32>
    %26 = arith.subf %22, %25 : vector<8x8xf32>
    %27 = math.exp %26 : vector<8x8xf32>
    %cst_10 = arith.constant dense<0.000000e+00> : vector<8xf32>
    %28 = vector.multi_reduction <add>, %27, %cst_10 [1] : vector<8x8xf32> to vector<8xf32>
    %29 = vector.shape_cast %28 : vector<8xf32> to vector<8x1xf32>
    %30 = tpu.reciprocal %29 {approx = true} : vector<8x1xf32> -> vector<8x1xf32>
    %31 = vector.broadcast %30 : vector<8x1xf32> to vector<8x8xf32>
    %32 = arith.mulf %27, %31 : vector<8x8xf32>
    %33 = arith.truncf %32 : vector<8x8xf32> to vector<8x8xbf16>
    %34 = vector.extract_strided_slice %16 {offsets = [0, 0], sizes = [8, 8], strides = [1, 1]} : vector<16x8xbf16> to vector<8x8xbf16>
    %cst_11 = arith.constant dense<0.000000e+00> : vector<8x8xf32>
    %35 = tpu.matmul %33, %34, %cst_11 {dimension_numbers = #tpu.dot_dimension_numbers<[1], [0], [0], [1], [0, 0, 1, 1], [], []>} : vector<8x8xbf16>, vector<8x8xbf16>, vector<8x8xf32> -> vector<8x8xf32>
    %36 = arith.truncf %35 : vector<8x8xf32> to vector<8x8xbf16>
    %cst_12 = arith.constant dense<0.000000e+00> : vector<8x32xf32>
    %37 = tpu.matmul %36, %17, %cst_12 {dimension_numbers = #tpu.dot_dimension_numbers<[1], [0], [0], [1], [0, 0, 1, 1], [], []>} : vector<8x8xbf16>, vector<8x32xbf16>, vector<8x32xf32> -> vector<8x32xf32>
    %38 = vector.extract_strided_slice %14 {offsets = [8, 0], sizes = [8, 8], strides = [1, 1]} : vector<16x8xbf16> to vector<8x8xbf16>
    %39 = vector.extract_strided_slice %15 {offsets = [8, 0], sizes = [8, 8], strides = [1, 1]} : vector<16x8xbf16> to vector<8x8xbf16>
    %cst_13 = arith.constant dense<0.000000e+00> : vector<8x8xf32>
    %40 = tpu.matmul %38, %39, %cst_13 {dimension_numbers = #tpu.dot_dimension_numbers<[1], [1], [0], [0], [0, 0, 1, 0], [], []>} : vector<8x8xbf16>, vector<8x8xbf16>, vector<8x8xf32> -> vector<8x8xf32>
    %cst_14 = arith.constant 0.353553385 : f32
    %41 = vector.broadcast %cst_14 : f32 to vector<8x8xf32>
    %42 = arith.mulf %40, %41 : vector<8x8xf32>
    %cst_15 = arith.constant dense<0xFF800000> : vector<8xf32>
    %43 = vector.multi_reduction <maximumf>, %42, %cst_15 [1] : vector<8x8xf32> to vector<8xf32>
    %44 = vector.shape_cast %43 : vector<8xf32> to vector<8x1xf32>
    %45 = vector.broadcast %44 : vector<8x1xf32> to vector<8x8xf32>
    %46 = arith.subf %42, %45 : vector<8x8xf32>
    %47 = math.exp %46 : vector<8x8xf32>
    %cst_16 = arith.constant dense<0.000000e+00> : vector<8xf32>
    %48 = vector.multi_reduction <add>, %47, %cst_16 [1] : vector<8x8xf32> to vector<8xf32>
    %49 = vector.shape_cast %48 : vector<8xf32> to vector<8x1xf32>
    %50 = tpu.reciprocal %49 {approx = true} : vector<8x1xf32> -> vector<8x1xf32>
    %51 = vector.broadcast %50 : vector<8x1xf32> to vector<8x8xf32>
    %52 = arith.mulf %47, %51 : vector<8x8xf32>
    %53 = arith.truncf %52 : vector<8x8xf32> to vector<8x8xbf16>
    %54 = vector.extract_strided_slice %16 {offsets = [8, 0], sizes = [8, 8], strides = [1, 1]} : vector<16x8xbf16> to vector<8x8xbf16>
    %cst_17 = arith.constant dense<0.000000e+00> : vector<8x8xf32>
    %55 = tpu.matmul %53, %54, %cst_17 {dimension_numbers = #tpu.dot_dimension_numbers<[1], [0], [0], [1], [0, 0, 1, 1], [], []>} : vector<8x8xbf16>, vector<8x8xbf16>, vector<8x8xf32> -> vector<8x8xf32>
    %56 = arith.truncf %55 : vector<8x8xf32> to vector<8x8xbf16>
    %cst_18 = arith.constant dense<0.000000e+00> : vector<8x32xf32>
    %57 = tpu.matmul %56, %17, %cst_18 {dimension_numbers = #tpu.dot_dimension_numbers<[1], [0], [0], [1], [0, 0, 1, 1], [], []>} : vector<8x8xbf16>, vector<8x32xbf16>, vector<8x32xf32> -> vector<8x32xf32>
    %58 = vector.extract_strided_slice %9 {offsets = [0, 8], sizes = [16, 8], strides = [1, 1]} : vector<16x32xbf16> to vector<16x8xbf16>
    %59 = vector.extract_strided_slice %10 {offsets = [0, 8], sizes = [16, 8], strides = [1, 1]} : vector<16x32xbf16> to vector<16x8xbf16>
    %60 = vector.extract_strided_slice %11 {offsets = [0, 8], sizes = [16, 8], strides = [1, 1]} : vector<16x32xbf16> to vector<16x8xbf16>
    %61 = vector.extract_strided_slice %12 {offsets = [8, 0], sizes = [8, 32], strides = [1, 1]} : vector<32x32xbf16> to vector<8x32xbf16>
    %62 = vector.extract_strided_slice %58 {offsets = [0, 0], sizes = [8, 8], strides = [1, 1]} : vector<16x8xbf16> to vector<8x8xbf16>
    %63 = vector.extract_strided_slice %59 {offsets = [0, 0], sizes = [8, 8], strides = [1, 1]} : vector<16x8xbf16> to vector<8x8xbf16>
    %cst_19 = arith.constant dense<0.000000e+00> : vector<8x8xf32>
    %64 = tpu.matmul %62, %63, %cst_19 {dimension_numbers = #tpu.dot_dimension_numbers<[1], [1], [0], [0], [0, 0, 1, 0], [], []>} : vector<8x8xbf16>, vector<8x8xbf16>, vector<8x8xf32> -> vector<8x8xf32>
    %cst_20 = arith.constant 0.353553385 : f32
    %65 = vector.broadcast %cst_20 : f32 to vector<8x8xf32>
    %66 = arith.mulf %64, %65 : vector<8x8xf32>
    %cst_21 = arith.constant dense<0xFF800000> : vector<8xf32>
    %67 = vector.multi_reduction <maximumf>, %66, %cst_21 [1] : vector<8x8xf32> to vector<8xf32>
    %68 = vector.shape_cast %67 : vector<8xf32> to vector<8x1xf32>
    %69 = vector.broadcast %68 : vector<8x1xf32> to vector<8x8xf32>
    %70 = arith.subf %66, %69 : vector<8x8xf32>
    %71 = math.exp %70 : vector<8x8xf32>
    %cst_22 = arith.constant dense<0.000000e+00> : vector<8xf32>
    %72 = vector.multi_reduction <add>, %71, %cst_22 [1] : vector<8x8xf32> to vector<8xf32>
    %73 = vector.shape_cast %72 : vector<8xf32> to vector<8x1xf32>
    %74 = tpu.reciprocal %73 {approx = true} : vector<8x1xf32> -> vector<8x1xf32>
    %75 = vector.broadcast %74 : vector<8x1xf32> to vector<8x8xf32>
    %76 = arith.mulf %71, %75 : vector<8x8xf32>
    %77 = arith.truncf %76 : vector<8x8xf32> to vector<8x8xbf16>
    %78 = vector.extract_strided_slice %60 {offsets = [0, 0], sizes = [8, 8], strides = [1, 1]} : vector<16x8xbf16> to vector<8x8xbf16>
    %cst_23 = arith.constant dense<0.000000e+00> : vector<8x8xf32>
    %79 = tpu.matmul %77, %78, %cst_23 {dimension_numbers = #tpu.dot_dimension_numbers<[1], [0], [0], [1], [0, 0, 1, 1], [], []>} : vector<8x8xbf16>, vector<8x8xbf16>, vector<8x8xf32> -> vector<8x8xf32>
    %80 = arith.truncf %79 : vector<8x8xf32> to vector<8x8xbf16>
    %cst_24 = arith.constant dense<0.000000e+00> : vector<8x32xf32>
    %81 = tpu.matmul %80, %61, %cst_24 {dimension_numbers = #tpu.dot_dimension_numbers<[1], [0], [0], [1], [0, 0, 1, 1], [], []>} : vector<8x8xbf16>, vector<8x32xbf16>, vector<8x32xf32> -> vector<8x32xf32>
    %82 = arith.addf %37, %81 : vector<8x32xf32>
    %83 = vector.extract_strided_slice %58 {offsets = [8, 0], sizes = [8, 8], strides = [1, 1]} : vector<16x8xbf16> to vector<8x8xbf16>
    %84 = vector.extract_strided_slice %59 {offsets = [8, 0], sizes = [8, 8], strides = [1, 1]} : vector<16x8xbf16> to vector<8x8xbf16>
    %cst_25 = arith.constant dense<0.000000e+00> : vector<8x8xf32>
    %85 = tpu.matmul %83, %84, %cst_25 {dimension_numbers = #tpu.dot_dimension_numbers<[1], [1], [0], [0], [0, 0, 1, 0], [], []>} : vector<8x8xbf16>, vector<8x8xbf16>, vector<8x8xf32> -> vector<8x8xf32>
    %cst_26 = arith.constant 0.353553385 : f32
    %86 = vector.broadcast %cst_26 : f32 to vector<8x8xf32>
    %87 = arith.mulf %85, %86 : vector<8x8xf32>
    %cst_27 = arith.constant dense<0xFF800000> : vector<8xf32>
    %88 = vector.multi_reduction <maximumf>, %87, %cst_27 [1] : vector<8x8xf32> to vector<8xf32>
    %89 = vector.shape_cast %88 : vector<8xf32> to vector<8x1xf32>
    %90 = vector.broadcast %89 : vector<8x1xf32> to vector<8x8xf32>
    %91 = arith.subf %87, %90 : vector<8x8xf32>
    %92 = math.exp %91 : vector<8x8xf32>
    %cst_28 = arith.constant dense<0.000000e+00> : vector<8xf32>
    %93 = vector.multi_reduction <add>, %92, %cst_28 [1] : vector<8x8xf32> to vector<8xf32>
    %94 = vector.shape_cast %93 : vector<8xf32> to vector<8x1xf32>
    %95 = tpu.reciprocal %94 {approx = true} : vector<8x1xf32> -> vector<8x1xf32>
    %96 = vector.broadcast %95 : vector<8x1xf32> to vector<8x8xf32>
    %97 = arith.mulf %92, %96 : vector<8x8xf32>
    %98 = arith.truncf %97 : vector<8x8xf32> to vector<8x8xbf16>
    %99 = vector.extract_strided_slice %60 {offsets = [8, 0], sizes = [8, 8], strides = [1, 1]} : vector<16x8xbf16> to vector<8x8xbf16>
    %cst_29 = arith.constant dense<0.000000e+00> : vector<8x8xf32>
    %100 = tpu.matmul %98, %99, %cst_29 {dimension_numbers = #tpu.dot_dimension_numbers<[1], [0], [0], [1], [0, 0, 1, 1], [], []>} : vector<8x8xbf16>, vector<8x8xbf16>, vector<8x8xf32> -> vector<8x8xf32>
    %101 = arith.truncf %100 : vector<8x8xf32> to vector<8x8xbf16>
    %cst_30 = arith.constant dense<0.000000e+00> : vector<8x32xf32>
    %102 = tpu.matmul %101, %61, %cst_30 {dimension_numbers = #tpu.dot_dimension_numbers<[1], [0], [0], [1], [0, 0, 1, 1], [], []>} : vector<8x8xbf16>, vector<8x32xbf16>, vector<8x32xf32> -> vector<8x32xf32>
    %103 = arith.addf %57, %102 : vector<8x32xf32>
    %104 = vector.extract_strided_slice %9 {offsets = [0, 16], sizes = [16, 8], strides = [1, 1]} : vector<16x32xbf16> to vector<16x8xbf16>
    %105 = vector.extract_strided_slice %10 {offsets = [0, 16], sizes = [16, 8], strides = [1, 1]} : vector<16x32xbf16> to vector<16x8xbf16>
    %106 = vector.extract_strided_slice %11 {offsets = [0, 16], sizes = [16, 8], strides = [1, 1]} : vector<16x32xbf16> to vector<16x8xbf16>
    %107 = vector.extract_strided_slice %12 {offsets = [16, 0], sizes = [8, 32], strides = [1, 1]} : vector<32x32xbf16> to vector<8x32xbf16>
    %108 = vector.extract_strided_slice %104 {offsets = [0, 0], sizes = [8, 8], strides = [1, 1]} : vector<16x8xbf16> to vector<8x8xbf16>
    %109 = vector.extract_strided_slice %105 {offsets = [0, 0], sizes = [8, 8], strides = [1, 1]} : vector<16x8xbf16> to vector<8x8xbf16>
    %cst_31 = arith.constant dense<0.000000e+00> : vector<8x8xf32>
    %110 = tpu.matmul %108, %109, %cst_31 {dimension_numbers = #tpu.dot_dimension_numbers<[1], [1], [0], [0], [0, 0, 1, 0], [], []>} : vector<8x8xbf16>, vector<8x8xbf16>, vector<8x8xf32> -> vector<8x8xf32>
    %cst_32 = arith.constant 0.353553385 : f32
    %111 = vector.broadcast %cst_32 : f32 to vector<8x8xf32>
    %112 = arith.mulf %110, %111 : vector<8x8xf32>
    %cst_33 = arith.constant dense<0xFF800000> : vector<8xf32>
    %113 = vector.multi_reduction <maximumf>, %112, %cst_33 [1] : vector<8x8xf32> to vector<8xf32>
    %114 = vector.shape_cast %113 : vector<8xf32> to vector<8x1xf32>
    %115 = vector.broadcast %114 : vector<8x1xf32> to vector<8x8xf32>
    %116 = arith.subf %112, %115 : vector<8x8xf32>
    %117 = math.exp %116 : vector<8x8xf32>
    %cst_34 = arith.constant dense<0.000000e+00> : vector<8xf32>
    %118 = vector.multi_reduction <add>, %117, %cst_34 [1] : vector<8x8xf32> to vector<8xf32>
    %119 = vector.shape_cast %118 : vector<8xf32> to vector<8x1xf32>
    %120 = tpu.reciprocal %119 {approx = true} : vector<8x1xf32> -> vector<8x1xf32>
    %121 = vector.broadcast %120 : vector<8x1xf32> to vector<8x8xf32>
    %122 = arith.mulf %117, %121 : vector<8x8xf32>
    %123 = arith.truncf %122 : vector<8x8xf32> to vector<8x8xbf16>
    %124 = vector.extract_strided_slice %106 {offsets = [0, 0], sizes = [8, 8], strides = [1, 1]} : vector<16x8xbf16> to vector<8x8xbf16>
    %cst_35 = arith.constant dense<0.000000e+00> : vector<8x8xf32>
    %125 = tpu.matmul %123, %124, %cst_35 {dimension_numbers = #tpu.dot_dimension_numbers<[1], [0], [0], [1], [0, 0, 1, 1], [], []>} : vector<8x8xbf16>, vector<8x8xbf16>, vector<8x8xf32> -> vector<8x8xf32>
    %126 = arith.truncf %125 : vector<8x8xf32> to vector<8x8xbf16>
    %cst_36 = arith.constant dense<0.000000e+00> : vector<8x32xf32>
    %127 = tpu.matmul %126, %107, %cst_36 {dimension_numbers = #tpu.dot_dimension_numbers<[1], [0], [0], [1], [0, 0, 1, 1], [], []>} : vector<8x8xbf16>, vector<8x32xbf16>, vector<8x32xf32> -> vector<8x32xf32>
    %128 = arith.addf %82, %127 : vector<8x32xf32>
    %129 = vector.extract_strided_slice %104 {offsets = [8, 0], sizes = [8, 8], strides = [1, 1]} : vector<16x8xbf16> to vector<8x8xbf16>
    %130 = vector.extract_strided_slice %105 {offsets = [8, 0], sizes = [8, 8], strides = [1, 1]} : vector<16x8xbf16> to vector<8x8xbf16>
    %cst_37 = arith.constant dense<0.000000e+00> : vector<8x8xf32>
    %131 = tpu.matmul %129, %130, %cst_37 {dimension_numbers = #tpu.dot_dimension_numbers<[1], [1], [0], [0], [0, 0, 1, 0], [], []>} : vector<8x8xbf16>, vector<8x8xbf16>, vector<8x8xf32> -> vector<8x8xf32>
    %cst_38 = arith.constant 0.353553385 : f32
    %132 = vector.broadcast %cst_38 : f32 to vector<8x8xf32>
    %133 = arith.mulf %131, %132 : vector<8x8xf32>
    %cst_39 = arith.constant dense<0xFF800000> : vector<8xf32>
    %134 = vector.multi_reduction <maximumf>, %133, %cst_39 [1] : vector<8x8xf32> to vector<8xf32>
    %135 = vector.shape_cast %134 : vector<8xf32> to vector<8x1xf32>
    %136 = vector.broadcast %135 : vector<8x1xf32> to vector<8x8xf32>
    %137 = arith.subf %133, %136 : vector<8x8xf32>
    %138 = math.exp %137 : vector<8x8xf32>
    %cst_40 = arith.constant dense<0.000000e+00> : vector<8xf32>
    %139 = vector.multi_reduction <add>, %138, %cst_40 [1] : vector<8x8xf32> to vector<8xf32>
    %140 = vector.shape_cast %139 : vector<8xf32> to vector<8x1xf32>
    %141 = tpu.reciprocal %140 {approx = true} : vector<8x1xf32> -> vector<8x1xf32>
    %142 = vector.broadcast %141 : vector<8x1xf32> to vector<8x8xf32>
    %143 = arith.mulf %138, %142 : vector<8x8xf32>
    %144 = arith.truncf %143 : vector<8x8xf32> to vector<8x8xbf16>
    %145 = vector.extract_strided_slice %106 {offsets = [8, 0], sizes = [8, 8], strides = [1, 1]} : vector<16x8xbf16> to vector<8x8xbf16>
    %cst_41 = arith.constant dense<0.000000e+00> : vector<8x8xf32>
    %146 = tpu.matmul %144, %145, %cst_41 {dimension_numbers = #tpu.dot_dimension_numbers<[1], [0], [0], [1], [0, 0, 1, 1], [], []>} : vector<8x8xbf16>, vector<8x8xbf16>, vector<8x8xf32> -> vector<8x8xf32>
    %147 = arith.truncf %146 : vector<8x8xf32> to vector<8x8xbf16>
    %cst_42 = arith.constant dense<0.000000e+00> : vector<8x32xf32>
    %148 = tpu.matmul %147, %107, %cst_42 {dimension_numbers = #tpu.dot_dimension_numbers<[1], [0], [0], [1], [0, 0, 1, 1], [], []>} : vector<8x8xbf16>, vector<8x32xbf16>, vector<8x32xf32> -> vector<8x32xf32>
    %149 = arith.addf %103, %148 : vector<8x32xf32>
    %150 = vector.extract_strided_slice %9 {offsets = [0, 24], sizes = [16, 8], strides = [1, 1]} : vector<16x32xbf16> to vector<16x8xbf16>
    %151 = vector.extract_strided_slice %10 {offsets = [0, 24], sizes = [16, 8], strides = [1, 1]} : vector<16x32xbf16> to vector<16x8xbf16>
    %152 = vector.extract_strided_slice %11 {offsets = [0, 24], sizes = [16, 8], strides = [1, 1]} : vector<16x32xbf16> to vector<16x8xbf16>
    %153 = vector.extract_strided_slice %12 {offsets = [24, 0], sizes = [8, 32], strides = [1, 1]} : vector<32x32xbf16> to vector<8x32xbf16>
    %154 = vector.extract_strided_slice %150 {offsets = [0, 0], sizes = [8, 8], strides = [1, 1]} : vector<16x8xbf16> to vector<8x8xbf16>
    %155 = vector.extract_strided_slice %151 {offsets = [0, 0], sizes = [8, 8], strides = [1, 1]} : vector<16x8xbf16> to vector<8x8xbf16>
    %cst_43 = arith.constant dense<0.000000e+00> : vector<8x8xf32>
    %156 = tpu.matmul %154, %155, %cst_43 {dimension_numbers = #tpu.dot_dimension_numbers<[1], [1], [0], [0], [0, 0, 1, 0], [], []>} : vector<8x8xbf16>, vector<8x8xbf16>, vector<8x8xf32> -> vector<8x8xf32>
    %cst_44 = arith.constant 0.353553385 : f32
    %157 = vector.broadcast %cst_44 : f32 to vector<8x8xf32>
    %158 = arith.mulf %156, %157 : vector<8x8xf32>
    %cst_45 = arith.constant dense<0xFF800000> : vector<8xf32>
    %159 = vector.multi_reduction <maximumf>, %158, %cst_45 [1] : vector<8x8xf32> to vector<8xf32>
    %160 = vector.shape_cast %159 : vector<8xf32> to vector<8x1xf32>
    %161 = vector.broadcast %160 : vector<8x1xf32> to vector<8x8xf32>
    %162 = arith.subf %158, %161 : vector<8x8xf32>
    %163 = math.exp %162 : vector<8x8xf32>
    %cst_46 = arith.constant dense<0.000000e+00> : vector<8xf32>
    %164 = vector.multi_reduction <add>, %163, %cst_46 [1] : vector<8x8xf32> to vector<8xf32>
    %165 = vector.shape_cast %164 : vector<8xf32> to vector<8x1xf32>
    %166 = tpu.reciprocal %165 {approx = true} : vector<8x1xf32> -> vector<8x1xf32>
    %167 = vector.broadcast %166 : vector<8x1xf32> to vector<8x8xf32>
    %168 = arith.mulf %163, %167 : vector<8x8xf32>
    %169 = arith.truncf %168 : vector<8x8xf32> to vector<8x8xbf16>
    %170 = vector.extract_strided_slice %152 {offsets = [0, 0], sizes = [8, 8], strides = [1, 1]} : vector<16x8xbf16> to vector<8x8xbf16>
    %cst_47 = arith.constant dense<0.000000e+00> : vector<8x8xf32>
    %171 = tpu.matmul %169, %170, %cst_47 {dimension_numbers = #tpu.dot_dimension_numbers<[1], [0], [0], [1], [0, 0, 1, 1], [], []>} : vector<8x8xbf16>, vector<8x8xbf16>, vector<8x8xf32> -> vector<8x8xf32>
    %172 = arith.truncf %171 : vector<8x8xf32> to vector<8x8xbf16>
    %cst_48 = arith.constant dense<0.000000e+00> : vector<8x32xf32>
    %173 = tpu.matmul %172, %153, %cst_48 {dimension_numbers = #tpu.dot_dimension_numbers<[1], [0], [0], [1], [0, 0, 1, 1], [], []>} : vector<8x8xbf16>, vector<8x32xbf16>, vector<8x32xf32> -> vector<8x32xf32>
    %174 = arith.addf %128, %173 : vector<8x32xf32>
    %175 = vector.extract_strided_slice %150 {offsets = [8, 0], sizes = [8, 8], strides = [1, 1]} : vector<16x8xbf16> to vector<8x8xbf16>
    %176 = vector.extract_strided_slice %151 {offsets = [8, 0], sizes = [8, 8], strides = [1, 1]} : vector<16x8xbf16> to vector<8x8xbf16>
    %cst_49 = arith.constant dense<0.000000e+00> : vector<8x8xf32>
    %177 = tpu.matmul %175, %176, %cst_49 {dimension_numbers = #tpu.dot_dimension_numbers<[1], [1], [0], [0], [0, 0, 1, 0], [], []>} : vector<8x8xbf16>, vector<8x8xbf16>, vector<8x8xf32> -> vector<8x8xf32>
    %cst_50 = arith.constant 0.353553385 : f32
    %178 = vector.broadcast %cst_50 : f32 to vector<8x8xf32>
    %179 = arith.mulf %177, %178 : vector<8x8xf32>
    %cst_51 = arith.constant dense<0xFF800000> : vector<8xf32>
    %180 = vector.multi_reduction <maximumf>, %179, %cst_51 [1] : vector<8x8xf32> to vector<8xf32>
    %181 = vector.shape_cast %180 : vector<8xf32> to vector<8x1xf32>
    %182 = vector.broadcast %181 : vector<8x1xf32> to vector<8x8xf32>
    %183 = arith.subf %179, %182 : vector<8x8xf32>
    %184 = math.exp %183 : vector<8x8xf32>
    %cst_52 = arith.constant dense<0.000000e+00> : vector<8xf32>
    %185 = vector.multi_reduction <add>, %184, %cst_52 [1] : vector<8x8xf32> to vector<8xf32>
    %186 = vector.shape_cast %185 : vector<8xf32> to vector<8x1xf32>
    %187 = tpu.reciprocal %186 {approx = true} : vector<8x1xf32> -> vector<8x1xf32>
    %188 = vector.broadcast %187 : vector<8x1xf32> to vector<8x8xf32>
    %189 = arith.mulf %184, %188 : vector<8x8xf32>
    %190 = arith.truncf %189 : vector<8x8xf32> to vector<8x8xbf16>
    %191 = vector.extract_strided_slice %152 {offsets = [8, 0], sizes = [8, 8], strides = [1, 1]} : vector<16x8xbf16> to vector<8x8xbf16>
    %cst_53 = arith.constant dense<0.000000e+00> : vector<8x8xf32>
    %192 = tpu.matmul %190, %191, %cst_53 {dimension_numbers = #tpu.dot_dimension_numbers<[1], [0], [0], [1], [0, 0, 1, 1], [], []>} : vector<8x8xbf16>, vector<8x8xbf16>, vector<8x8xf32> -> vector<8x8xf32>
    %193 = arith.truncf %192 : vector<8x8xf32> to vector<8x8xbf16>
    %cst_54 = arith.constant dense<0.000000e+00> : vector<8x32xf32>
    %194 = tpu.matmul %193, %153, %cst_54 {dimension_numbers = #tpu.dot_dimension_numbers<[1], [0], [0], [1], [0, 0, 1, 1], [], []>} : vector<8x8xbf16>, vector<8x32xbf16>, vector<8x32xf32> -> vector<8x32xf32>
    %195 = arith.addf %149, %194 : vector<8x32xf32>
    %c0_55 = arith.constant 0 : index
    %c0_56 = arith.constant 0 : index
    %196 = vector.load %arg10[%c0_55, %c0_56] : memref<16x32xf32, #tpu.memory_space<vmem>>, vector<8x32xf32>
    tpu.vector_store %arg10[%c0_55, %c0_56], %174 {strides = array<i32>} : memref<16x32xf32, #tpu.memory_space<vmem>>, vector<8x32xf32>,
    %c8 = arith.constant 8 : index
    %c0_57 = arith.constant 0 : index
    %197 = vector.load %arg10[%c8, %c0_57] : memref<16x32xf32, #tpu.memory_space<vmem>>, vector<8x32xf32>
    tpu.vector_store %arg10[%c8, %c0_57], %195 {strides = array<i32>} : memref<16x32xf32, #tpu.memory_space<vmem>>, vector<8x32xf32>,
    %c0_58 = arith.constant 0 : index
    %c0_59 = arith.constant 0 : index
    %198 = vector.load %arg10[%c0_58, %c0_59] : memref<16x32xf32, #tpu.memory_space<vmem>>, vector<16x32xf32>
    %199 = vector.broadcast %13 : vector<1x32xf32> to vector<16x32xf32>
    %200 = arith.addf %198, %199 : vector<16x32xf32>
    %201 = arith.addf %1, %200 : vector<16x32xf32>
    %cst_60 = arith.constant dense<0.000000e+00> : vector<16xf32>
    %202 = vector.multi_reduction <add>, %201, %cst_60 [1] : vector<16x32xf32> to vector<16xf32>
    %203 = vector.shape_cast %202 : vector<16xf32> to vector<16x1xf32>
    %cst_61 = arith.constant 3.200000e+01 : f32
    %204 = vector.broadcast %cst_61 : f32 to vector<16x1xf32>
    %205 = arith.divf %203, %204 : vector<16x1xf32>
    %206 = vector.broadcast %205 : vector<16x1xf32> to vector<16x32xf32>
    %207 = arith.subf %201, %206 : vector<16x32xf32>
    %208 = arith.mulf %207, %207 : vector<16x32xf32>
    %cst_62 = arith.constant dense<0.000000e+00> : vector<16xf32>
    %209 = vector.multi_reduction <add>, %208, %cst_62 [1] : vector<16x32xf32> to vector<16xf32>
    %210 = vector.shape_cast %209 : vector<16xf32> to vector<16x1xf32>
    %cst_63 = arith.constant 3.200000e+01 : f32
    %211 = vector.broadcast %cst_63 : f32 to vector<16x1xf32>
    %212 = arith.divf %210, %211 : vector<16x1xf32>
    %cst_64 = arith.constant 9.99999974E-6 : f32
    %213 = vector.broadcast %cst_64 : f32 to vector<16x1xf32>
    %214 = arith.addf %212, %213 : vector<16x1xf32>
    %215 = math.rsqrt %214 : vector<16x1xf32>
    %216 = vector.broadcast %215 : vector<16x1xf32> to vector<16x32xf32>
    %217 = arith.mulf %207, %216 : vector<16x32xf32>
    %218 = vector.extract_strided_slice %0 {offsets = [2, 0], sizes = [1, 32], strides = [1, 1]} : vector<12x128xf32> to vector<1x32xf32>
    %219 = vector.broadcast %218 : vector<1x32xf32> to vector<16x32xf32>
    %220 = arith.mulf %217, %219 : vector<16x32xf32>
    %221 = vector.extract_strided_slice %0 {offsets = [3, 0], sizes = [1, 32], strides = [1, 1]} : vector<12x128xf32> to vector<1x32xf32>
    %222 = vector.broadcast %221 : vector<1x32xf32> to vector<16x32xf32>
    %223 = arith.addf %220, %222 : vector<16x32xf32>
    %c0_65 = arith.constant 0 : index
    %c0_66 = arith.constant 0 : index
    %224 = vector.load %arg4[%c0_65, %c0_66] : memref<32x96xbf16, #tpu.memory_space<vmem>>, vector<32x96xbf16>
    %225 = arith.truncf %223 : vector<16x32xf32> to vector<16x32xbf16>
    %226 = vector.extract_strided_slice %224 {offsets = [0, 0], sizes = [32, 32], strides = [1, 1]} : vector<32x96xbf16> to vector<32x32xbf16>
    %cst_67 = arith.constant dense<0.000000e+00> : vector<16x32xf32>
    %227 = tpu.matmul %225, %226, %cst_67 {dimension_numbers = #tpu.dot_dimension_numbers<[1], [0], [0], [1], [0, 0, 1, 1], [], []>} : vector<16x32xbf16>, vector<32x32xbf16>, vector<16x32xf32> -> vector<16x32xf32>
    %228 = vector.extract_strided_slice %0 {offsets = [4, 0], sizes = [1, 32], strides = [1, 1]} : vector<12x128xf32> to vector<1x32xf32>
    %229 = vector.broadcast %228 : vector<1x32xf32> to vector<16x32xf32>
    %230 = arith.addf %227, %229 : vector<16x32xf32>
    %231 = arith.truncf %230 : vector<16x32xf32> to vector<16x32xbf16>
    %c0_68 = arith.constant 0 : index
    %c0_69 = arith.constant 0 : index
    %232 = vector.load %arg1[%c0_68, %c0_69] : memref<32x32xbf16, #tpu.memory_space<vmem>>, vector<32x32xbf16>
    %233 = vector.extract_strided_slice %224 {offsets = [0, 32], sizes = [32, 64], strides = [1, 1]} : vector<32x96xbf16> to vector<32x64xbf16>
    %cst_70 = arith.constant dense<0.000000e+00> : vector<32x64xf32>
    %234 = tpu.matmul %232, %233, %cst_70 {dimension_numbers = #tpu.dot_dimension_numbers<[1], [0], [0], [1], [0, 0, 1, 1], [], []>} : vector<32x32xbf16>, vector<32x64xbf16>, vector<32x64xf32> -> vector<32x64xf32>
    %235 = vector.extract_strided_slice %0 {offsets = [4, 32], sizes = [1, 64], strides = [1, 1]} : vector<12x128xf32> to vector<1x64xf32>
    %236 = vector.broadcast %235 : vector<1x64xf32> to vector<32x64xf32>
    %237 = arith.addf %234, %236 : vector<32x64xf32>
    %238 = arith.truncf %237 : vector<32x64xf32> to vector<32x64xbf16>
    %239 = vector.extract_strided_slice %238 {offsets = [0, 0], sizes = [32, 32], strides = [1, 1]} : vector<32x64xbf16> to vector<32x32xbf16>
    %240 = vector.extract_strided_slice %238 {offsets = [0, 32], sizes = [32, 32], strides = [1, 1]} : vector<32x64xbf16> to vector<32x32xbf16>
    %c0_71 = arith.constant 0 : index
    %c0_72 = arith.constant 0 : index
    %241 = vector.load %arg5[%c0_71, %c0_72] : memref<32x32xbf16, #tpu.memory_space<vmem>>, vector<32x32xbf16>
    %242 = vector.extract_strided_slice %0 {offsets = [5, 0], sizes = [1, 32], strides = [1, 1]} : vector<12x128xf32> to vector<1x32xf32>
    %243 = vector.extract_strided_slice %231 {offsets = [0, 0], sizes = [16, 8], strides = [1, 1]} : vector<16x32xbf16> to vector<16x8xbf16>
    %244 = vector.extract_strided_slice %239 {offsets = [0, 0], sizes = [32, 8], strides = [1, 1]} : vector<32x32xbf16> to vector<32x8xbf16>
    %245 = vector.extract_strided_slice %240 {offsets = [0, 0], sizes = [32, 8], strides = [1, 1]} : vector<32x32xbf16> to vector<32x8xbf16>
    %246 = vector.extract_strided_slice %241 {offsets = [0, 0], sizes = [8, 32], strides = [1, 1]} : vector<32x32xbf16> to vector<8x32xbf16>
    %247 = vector.extract_strided_slice %243 {offsets = [0, 0], sizes = [8, 8], strides = [1, 1]} : vector<16x8xbf16> to vector<8x8xbf16>
    %248 = vector.extract_strided_slice %244 {offsets = [0, 0], sizes = [16, 8], strides = [1, 1]} : vector<32x8xbf16> to vector<16x8xbf16>
    %cst_73 = arith.constant dense<0.000000e+00> : vector<8x16xf32>
    %249 = tpu.matmul %247, %248, %cst_73 {dimension_numbers = #tpu.dot_dimension_numbers<[1], [1], [0], [0], [0, 0, 1, 0], [], []>} : vector<8x8xbf16>, vector<16x8xbf16>, vector<8x16xf32> -> vector<8x16xf32>
    %cst_74 = arith.constant 0.353553385 : f32
    %250 = vector.broadcast %cst_74 : f32 to vector<8x16xf32>
    %251 = arith.mulf %249, %250 : vector<8x16xf32>
    %cst_75 = arith.constant dense<0xFF800000> : vector<8xf32>
    %252 = vector.multi_reduction <maximumf>, %251, %cst_75 [1] : vector<8x16xf32> to vector<8xf32>
    %253 = vector.shape_cast %252 : vector<8xf32> to vector<8x1xf32>
    %254 = vector.broadcast %253 : vector<8x1xf32> to vector<8x16xf32>
    %255 = arith.subf %251, %254 : vector<8x16xf32>
    %256 = math.exp %255 : vector<8x16xf32>
    %cst_76 = arith.constant dense<0.000000e+00> : vector<8xf32>
    %257 = vector.multi_reduction <add>, %256, %cst_76 [1] : vector<8x16xf32> to vector<8xf32>
    %258 = vector.shape_cast %257 : vector<8xf32> to vector<8x1xf32>
    %259 = tpu.reciprocal %258 {approx = true} : vector<8x1xf32> -> vector<8x1xf32>
    %260 = vector.broadcast %259 : vector<8x1xf32> to vector<8x16xf32>
    %261 = arith.mulf %256, %260 : vector<8x16xf32>
    %262 = arith.truncf %261 : vector<8x16xf32> to vector<8x16xbf16>
    %263 = vector.extract_strided_slice %245 {offsets = [0, 0], sizes = [16, 8], strides = [1, 1]} : vector<32x8xbf16> to vector<16x8xbf16>
    %cst_77 = arith.constant dense<0.000000e+00> : vector<8x8xf32>
    %264 = tpu.matmul %262, %263, %cst_77 {dimension_numbers = #tpu.dot_dimension_numbers<[1], [0], [0], [1], [0, 0, 1, 1], [], []>} : vector<8x16xbf16>, vector<16x8xbf16>, vector<8x8xf32> -> vector<8x8xf32>
    %265 = arith.truncf %264 : vector<8x8xf32> to vector<8x8xbf16>
    %cst_78 = arith.constant dense<0.000000e+00> : vector<8x32xf32>
    %266 = tpu.matmul %265, %246, %cst_78 {dimension_numbers = #tpu.dot_dimension_numbers<[1], [0], [0], [1], [0, 0, 1, 1], [], []>} : vector<8x8xbf16>, vector<8x32xbf16>, vector<8x32xf32> -> vector<8x32xf32>
    %267 = vector.extract_strided_slice %243 {offsets = [8, 0], sizes = [8, 8], strides = [1, 1]} : vector<16x8xbf16> to vector<8x8xbf16>
    %268 = vector.extract_strided_slice %244 {offsets = [16, 0], sizes = [16, 8], strides = [1, 1]} : vector<32x8xbf16> to vector<16x8xbf16>
    %cst_79 = arith.constant dense<0.000000e+00> : vector<8x16xf32>
    %269 = tpu.matmul %267, %268, %cst_79 {dimension_numbers = #tpu.dot_dimension_numbers<[1], [1], [0], [0], [0, 0, 1, 0], [], []>} : vector<8x8xbf16>, vector<16x8xbf16>, vector<8x16xf32> -> vector<8x16xf32>
    %cst_80 = arith.constant 0.353553385 : f32
    %270 = vector.broadcast %cst_80 : f32 to vector<8x16xf32>
    %271 = arith.mulf %269, %270 : vector<8x16xf32>
    %cst_81 = arith.constant dense<0xFF800000> : vector<8xf32>
    %272 = vector.multi_reduction <maximumf>, %271, %cst_81 [1] : vector<8x16xf32> to vector<8xf32>
    %273 = vector.shape_cast %272 : vector<8xf32> to vector<8x1xf32>
    %274 = vector.broadcast %273 : vector<8x1xf32> to vector<8x16xf32>
    %275 = arith.subf %271, %274 : vector<8x16xf32>
    %276 = math.exp %275 : vector<8x16xf32>
    %cst_82 = arith.constant dense<0.000000e+00> : vector<8xf32>
    %277 = vector.multi_reduction <add>, %276, %cst_82 [1] : vector<8x16xf32> to vector<8xf32>
    %278 = vector.shape_cast %277 : vector<8xf32> to vector<8x1xf32>
    %279 = tpu.reciprocal %278 {approx = true} : vector<8x1xf32> -> vector<8x1xf32>
    %280 = vector.broadcast %279 : vector<8x1xf32> to vector<8x16xf32>
    %281 = arith.mulf %276, %280 : vector<8x16xf32>
    %282 = arith.truncf %281 : vector<8x16xf32> to vector<8x16xbf16>
    %283 = vector.extract_strided_slice %245 {offsets = [16, 0], sizes = [16, 8], strides = [1, 1]} : vector<32x8xbf16> to vector<16x8xbf16>
    %cst_83 = arith.constant dense<0.000000e+00> : vector<8x8xf32>
    %284 = tpu.matmul %282, %283, %cst_83 {dimension_numbers = #tpu.dot_dimension_numbers<[1], [0], [0], [1], [0, 0, 1, 1], [], []>} : vector<8x16xbf16>, vector<16x8xbf16>, vector<8x8xf32> -> vector<8x8xf32>
    %285 = arith.truncf %284 : vector<8x8xf32> to vector<8x8xbf16>
    %cst_84 = arith.constant dense<0.000000e+00> : vector<8x32xf32>
    %286 = tpu.matmul %285, %246, %cst_84 {dimension_numbers = #tpu.dot_dimension_numbers<[1], [0], [0], [1], [0, 0, 1, 1], [], []>} : vector<8x8xbf16>, vector<8x32xbf16>, vector<8x32xf32> -> vector<8x32xf32>
    %287 = vector.extract_strided_slice %231 {offsets = [0, 8], sizes = [16, 8], strides = [1, 1]} : vector<16x32xbf16> to vector<16x8xbf16>
    %288 = vector.extract_strided_slice %239 {offsets = [0, 8], sizes = [32, 8], strides = [1, 1]} : vector<32x32xbf16> to vector<32x8xbf16>
    %289 = vector.extract_strided_slice %240 {offsets = [0, 8], sizes = [32, 8], strides = [1, 1]} : vector<32x32xbf16> to vector<32x8xbf16>
    %290 = vector.extract_strided_slice %241 {offsets = [8, 0], sizes = [8, 32], strides = [1, 1]} : vector<32x32xbf16> to vector<8x32xbf16>
    %291 = vector.extract_strided_slice %287 {offsets = [0, 0], sizes = [8, 8], strides = [1, 1]} : vector<16x8xbf16> to vector<8x8xbf16>
    %292 = vector.extract_strided_slice %288 {offsets = [0, 0], sizes = [16, 8], strides = [1, 1]} : vector<32x8xbf16> to vector<16x8xbf16>
    %cst_85 = arith.constant dense<0.000000e+00> : vector<8x16xf32>
    %293 = tpu.matmul %291, %292, %cst_85 {dimension_numbers = #tpu.dot_dimension_numbers<[1], [1], [0], [0], [0, 0, 1, 0], [], []>} : vector<8x8xbf16>, vector<16x8xbf16>, vector<8x16xf32> -> vector<8x16xf32>
    %cst_86 = arith.constant 0.353553385 : f32
    %294 = vector.broadcast %cst_86 : f32 to vector<8x16xf32>
    %295 = arith.mulf %293, %294 : vector<8x16xf32>
    %cst_87 = arith.constant dense<0xFF800000> : vector<8xf32>
    %296 = vector.multi_reduction <maximumf>, %295, %cst_87 [1] : vector<8x16xf32> to vector<8xf32>
    %297 = vector.shape_cast %296 : vector<8xf32> to vector<8x1xf32>
    %298 = vector.broadcast %297 : vector<8x1xf32> to vector<8x16xf32>
    %299 = arith.subf %295, %298 : vector<8x16xf32>
    %300 = math.exp %299 : vector<8x16xf32>
    %cst_88 = arith.constant dense<0.000000e+00> : vector<8xf32>
    %301 = vector.multi_reduction <add>, %300, %cst_88 [1] : vector<8x16xf32> to vector<8xf32>
    %302 = vector.shape_cast %301 : vector<8xf32> to vector<8x1xf32>
    %303 = tpu.reciprocal %302 {approx = true} : vector<8x1xf32> -> vector<8x1xf32>
    %304 = vector.broadcast %303 : vector<8x1xf32> to vector<8x16xf32>
    %305 = arith.mulf %300, %304 : vector<8x16xf32>
    %306 = arith.truncf %305 : vector<8x16xf32> to vector<8x16xbf16>
    %307 = vector.extract_strided_slice %289 {offsets = [0, 0], sizes = [16, 8], strides = [1, 1]} : vector<32x8xbf16> to vector<16x8xbf16>
    %cst_89 = arith.constant dense<0.000000e+00> : vector<8x8xf32>
    %308 = tpu.matmul %306, %307, %cst_89 {dimension_numbers = #tpu.dot_dimension_numbers<[1], [0], [0], [1], [0, 0, 1, 1], [], []>} : vector<8x16xbf16>, vector<16x8xbf16>, vector<8x8xf32> -> vector<8x8xf32>
    %309 = arith.truncf %308 : vector<8x8xf32> to vector<8x8xbf16>
    %cst_90 = arith.constant dense<0.000000e+00> : vector<8x32xf32>
    %310 = tpu.matmul %309, %290, %cst_90 {dimension_numbers = #tpu.dot_dimension_numbers<[1], [0], [0], [1], [0, 0, 1, 1], [], []>} : vector<8x8xbf16>, vector<8x32xbf16>, vector<8x32xf32> -> vector<8x32xf32>
    %311 = arith.addf %266, %310 : vector<8x32xf32>
    %312 = vector.extract_strided_slice %287 {offsets = [8, 0], sizes = [8, 8], strides = [1, 1]} : vector<16x8xbf16> to vector<8x8xbf16>
    %313 = vector.extract_strided_slice %288 {offsets = [16, 0], sizes = [16, 8], strides = [1, 1]} : vector<32x8xbf16> to vector<16x8xbf16>
    %cst_91 = arith.constant dense<0.000000e+00> : vector<8x16xf32>
    %314 = tpu.matmul %312, %313, %cst_91 {dimension_numbers = #tpu.dot_dimension_numbers<[1], [1], [0], [0], [0, 0, 1, 0], [], []>} : vector<8x8xbf16>, vector<16x8xbf16>, vector<8x16xf32> -> vector<8x16xf32>
    %cst_92 = arith.constant 0.353553385 : f32
    %315 = vector.broadcast %cst_92 : f32 to vector<8x16xf32>
    %316 = arith.mulf %314, %315 : vector<8x16xf32>
    %cst_93 = arith.constant dense<0xFF800000> : vector<8xf32>
    %317 = vector.multi_reduction <maximumf>, %316, %cst_93 [1] : vector<8x16xf32> to vector<8xf32>
    %318 = vector.shape_cast %317 : vector<8xf32> to vector<8x1xf32>
    %319 = vector.broadcast %318 : vector<8x1xf32> to vector<8x16xf32>
    %320 = arith.subf %316, %319 : vector<8x16xf32>
    %321 = math.exp %320 : vector<8x16xf32>
    %cst_94 = arith.constant dense<0.000000e+00> : vector<8xf32>
    %322 = vector.multi_reduction <add>, %321, %cst_94 [1] : vector<8x16xf32> to vector<8xf32>
    %323 = vector.shape_cast %322 : vector<8xf32> to vector<8x1xf32>
    %324 = tpu.reciprocal %323 {approx = true} : vector<8x1xf32> -> vector<8x1xf32>
    %325 = vector.broadcast %324 : vector<8x1xf32> to vector<8x16xf32>
    %326 = arith.mulf %321, %325 : vector<8x16xf32>
    %327 = arith.truncf %326 : vector<8x16xf32> to vector<8x16xbf16>
    %328 = vector.extract_strided_slice %289 {offsets = [16, 0], sizes = [16, 8], strides = [1, 1]} : vector<32x8xbf16> to vector<16x8xbf16>
    %cst_95 = arith.constant dense<0.000000e+00> : vector<8x8xf32>
    %329 = tpu.matmul %327, %328, %cst_95 {dimension_numbers = #tpu.dot_dimension_numbers<[1], [0], [0], [1], [0, 0, 1, 1], [], []>} : vector<8x16xbf16>, vector<16x8xbf16>, vector<8x8xf32> -> vector<8x8xf32>
    %330 = arith.truncf %329 : vector<8x8xf32> to vector<8x8xbf16>
    %cst_96 = arith.constant dense<0.000000e+00> : vector<8x32xf32>
    %331 = tpu.matmul %330, %290, %cst_96 {dimension_numbers = #tpu.dot_dimension_numbers<[1], [0], [0], [1], [0, 0, 1, 1], [], []>} : vector<8x8xbf16>, vector<8x32xbf16>, vector<8x32xf32> -> vector<8x32xf32>
    %332 = arith.addf %286, %331 : vector<8x32xf32>
    %333 = vector.extract_strided_slice %231 {offsets = [0, 16], sizes = [16, 8], strides = [1, 1]} : vector<16x32xbf16> to vector<16x8xbf16>
    %334 = vector.extract_strided_slice %239 {offsets = [0, 16], sizes = [32, 8], strides = [1, 1]} : vector<32x32xbf16> to vector<32x8xbf16>
    %335 = vector.extract_strided_slice %240 {offsets = [0, 16], sizes = [32, 8], strides = [1, 1]} : vector<32x32xbf16> to vector<32x8xbf16>
    %336 = vector.extract_strided_slice %241 {offsets = [16, 0], sizes = [8, 32], strides = [1, 1]} : vector<32x32xbf16> to vector<8x32xbf16>
    %337 = vector.extract_strided_slice %333 {offsets = [0, 0], sizes = [8, 8], strides = [1, 1]} : vector<16x8xbf16> to vector<8x8xbf16>
    %338 = vector.extract_strided_slice %334 {offsets = [0, 0], sizes = [16, 8], strides = [1, 1]} : vector<32x8xbf16> to vector<16x8xbf16>
    %cst_97 = arith.constant dense<0.000000e+00> : vector<8x16xf32>
    %339 = tpu.matmul %337, %338, %cst_97 {dimension_numbers = #tpu.dot_dimension_numbers<[1], [1], [0], [0], [0, 0, 1, 0], [], []>} : vector<8x8xbf16>, vector<16x8xbf16>, vector<8x16xf32> -> vector<8x16xf32>
    %cst_98 = arith.constant 0.353553385 : f32
    %340 = vector.broadcast %cst_98 : f32 to vector<8x16xf32>
    %341 = arith.mulf %339, %340 : vector<8x16xf32>
    %cst_99 = arith.constant dense<0xFF800000> : vector<8xf32>
    %342 = vector.multi_reduction <maximumf>, %341, %cst_99 [1] : vector<8x16xf32> to vector<8xf32>
    %343 = vector.shape_cast %342 : vector<8xf32> to vector<8x1xf32>
    %344 = vector.broadcast %343 : vector<8x1xf32> to vector<8x16xf32>
    %345 = arith.subf %341, %344 : vector<8x16xf32>
    %346 = math.exp %345 : vector<8x16xf32>
    %cst_100 = arith.constant dense<0.000000e+00> : vector<8xf32>
    %347 = vector.multi_reduction <add>, %346, %cst_100 [1] : vector<8x16xf32> to vector<8xf32>
    %348 = vector.shape_cast %347 : vector<8xf32> to vector<8x1xf32>
    %349 = tpu.reciprocal %348 {approx = true} : vector<8x1xf32> -> vector<8x1xf32>
    %350 = vector.broadcast %349 : vector<8x1xf32> to vector<8x16xf32>
    %351 = arith.mulf %346, %350 : vector<8x16xf32>
    %352 = arith.truncf %351 : vector<8x16xf32> to vector<8x16xbf16>
    %353 = vector.extract_strided_slice %335 {offsets = [0, 0], sizes = [16, 8], strides = [1, 1]} : vector<32x8xbf16> to vector<16x8xbf16>
    %cst_101 = arith.constant dense<0.000000e+00> : vector<8x8xf32>
    %354 = tpu.matmul %352, %353, %cst_101 {dimension_numbers = #tpu.dot_dimension_numbers<[1], [0], [0], [1], [0, 0, 1, 1], [], []>} : vector<8x16xbf16>, vector<16x8xbf16>, vector<8x8xf32> -> vector<8x8xf32>
    %355 = arith.truncf %354 : vector<8x8xf32> to vector<8x8xbf16>
    %cst_102 = arith.constant dense<0.000000e+00> : vector<8x32xf32>
    %356 = tpu.matmul %355, %336, %cst_102 {dimension_numbers = #tpu.dot_dimension_numbers<[1], [0], [0], [1], [0, 0, 1, 1], [], []>} : vector<8x8xbf16>, vector<8x32xbf16>, vector<8x32xf32> -> vector<8x32xf32>
    %357 = arith.addf %311, %356 : vector<8x32xf32>
    %358 = vector.extract_strided_slice %333 {offsets = [8, 0], sizes = [8, 8], strides = [1, 1]} : vector<16x8xbf16> to vector<8x8xbf16>
    %359 = vector.extract_strided_slice %334 {offsets = [16, 0], sizes = [16, 8], strides = [1, 1]} : vector<32x8xbf16> to vector<16x8xbf16>
    %cst_103 = arith.constant dense<0.000000e+00> : vector<8x16xf32>
    %360 = tpu.matmul %358, %359, %cst_103 {dimension_numbers = #tpu.dot_dimension_numbers<[1], [1], [0], [0], [0, 0, 1, 0], [], []>} : vector<8x8xbf16>, vector<16x8xbf16>, vector<8x16xf32> -> vector<8x16xf32>
    %cst_104 = arith.constant 0.353553385 : f32
    %361 = vector.broadcast %cst_104 : f32 to vector<8x16xf32>
    %362 = arith.mulf %360, %361 : vector<8x16xf32>
    %cst_105 = arith.constant dense<0xFF800000> : vector<8xf32>
    %363 = vector.multi_reduction <maximumf>, %362, %cst_105 [1] : vector<8x16xf32> to vector<8xf32>
    %364 = vector.shape_cast %363 : vector<8xf32> to vector<8x1xf32>
    %365 = vector.broadcast %364 : vector<8x1xf32> to vector<8x16xf32>
    %366 = arith.subf %362, %365 : vector<8x16xf32>
    %367 = math.exp %366 : vector<8x16xf32>
    %cst_106 = arith.constant dense<0.000000e+00> : vector<8xf32>
    %368 = vector.multi_reduction <add>, %367, %cst_106 [1] : vector<8x16xf32> to vector<8xf32>
    %369 = vector.shape_cast %368 : vector<8xf32> to vector<8x1xf32>
    %370 = tpu.reciprocal %369 {approx = true} : vector<8x1xf32> -> vector<8x1xf32>
    %371 = vector.broadcast %370 : vector<8x1xf32> to vector<8x16xf32>
    %372 = arith.mulf %367, %371 : vector<8x16xf32>
    %373 = arith.truncf %372 : vector<8x16xf32> to vector<8x16xbf16>
    %374 = vector.extract_strided_slice %335 {offsets = [16, 0], sizes = [16, 8], strides = [1, 1]} : vector<32x8xbf16> to vector<16x8xbf16>
    %cst_107 = arith.constant dense<0.000000e+00> : vector<8x8xf32>
    %375 = tpu.matmul %373, %374, %cst_107 {dimension_numbers = #tpu.dot_dimension_numbers<[1], [0], [0], [1], [0, 0, 1, 1], [], []>} : vector<8x16xbf16>, vector<16x8xbf16>, vector<8x8xf32> -> vector<8x8xf32>
    %376 = arith.truncf %375 : vector<8x8xf32> to vector<8x8xbf16>
    %cst_108 = arith.constant dense<0.000000e+00> : vector<8x32xf32>
    %377 = tpu.matmul %376, %336, %cst_108 {dimension_numbers = #tpu.dot_dimension_numbers<[1], [0], [0], [1], [0, 0, 1, 1], [], []>} : vector<8x8xbf16>, vector<8x32xbf16>, vector<8x32xf32> -> vector<8x32xf32>
    %378 = arith.addf %332, %377 : vector<8x32xf32>
    %379 = vector.extract_strided_slice %231 {offsets = [0, 24], sizes = [16, 8], strides = [1, 1]} : vector<16x32xbf16> to vector<16x8xbf16>
    %380 = vector.extract_strided_slice %239 {offsets = [0, 24], sizes = [32, 8], strides = [1, 1]} : vector<32x32xbf16> to vector<32x8xbf16>
    %381 = vector.extract_strided_slice %240 {offsets = [0, 24], sizes = [32, 8], strides = [1, 1]} : vector<32x32xbf16> to vector<32x8xbf16>
    %382 = vector.extract_strided_slice %241 {offsets = [24, 0], sizes = [8, 32], strides = [1, 1]} : vector<32x32xbf16> to vector<8x32xbf16>
    %383 = vector.extract_strided_slice %379 {offsets = [0, 0], sizes = [8, 8], strides = [1, 1]} : vector<16x8xbf16> to vector<8x8xbf16>
    %384 = vector.extract_strided_slice %380 {offsets = [0, 0], sizes = [16, 8], strides = [1, 1]} : vector<32x8xbf16> to vector<16x8xbf16>
    %cst_109 = arith.constant dense<0.000000e+00> : vector<8x16xf32>
    %385 = tpu.matmul %383, %384, %cst_109 {dimension_numbers = #tpu.dot_dimension_numbers<[1], [1], [0], [0], [0, 0, 1, 0], [], []>} : vector<8x8xbf16>, vector<16x8xbf16>, vector<8x16xf32> -> vector<8x16xf32>
    %cst_110 = arith.constant 0.353553385 : f32
    %386 = vector.broadcast %cst_110 : f32 to vector<8x16xf32>
    %387 = arith.mulf %385, %386 : vector<8x16xf32>
    %cst_111 = arith.constant dense<0xFF800000> : vector<8xf32>
    %388 = vector.multi_reduction <maximumf>, %387, %cst_111 [1] : vector<8x16xf32> to vector<8xf32>
    %389 = vector.shape_cast %388 : vector<8xf32> to vector<8x1xf32>
    %390 = vector.broadcast %389 : vector<8x1xf32> to vector<8x16xf32>
    %391 = arith.subf %387, %390 : vector<8x16xf32>
    %392 = math.exp %391 : vector<8x16xf32>
    %cst_112 = arith.constant dense<0.000000e+00> : vector<8xf32>
    %393 = vector.multi_reduction <add>, %392, %cst_112 [1] : vector<8x16xf32> to vector<8xf32>
    %394 = vector.shape_cast %393 : vector<8xf32> to vector<8x1xf32>
    %395 = tpu.reciprocal %394 {approx = true} : vector<8x1xf32> -> vector<8x1xf32>
    %396 = vector.broadcast %395 : vector<8x1xf32> to vector<8x16xf32>
    %397 = arith.mulf %392, %396 : vector<8x16xf32>
    %398 = arith.truncf %397 : vector<8x16xf32> to vector<8x16xbf16>
    %399 = vector.extract_strided_slice %381 {offsets = [0, 0], sizes = [16, 8], strides = [1, 1]} : vector<32x8xbf16> to vector<16x8xbf16>
    %cst_113 = arith.constant dense<0.000000e+00> : vector<8x8xf32>
    %400 = tpu.matmul %398, %399, %cst_113 {dimension_numbers = #tpu.dot_dimension_numbers<[1], [0], [0], [1], [0, 0, 1, 1], [], []>} : vector<8x16xbf16>, vector<16x8xbf16>, vector<8x8xf32> -> vector<8x8xf32>
    %401 = arith.truncf %400 : vector<8x8xf32> to vector<8x8xbf16>
    %cst_114 = arith.constant dense<0.000000e+00> : vector<8x32xf32>
    %402 = tpu.matmul %401, %382, %cst_114 {dimension_numbers = #tpu.dot_dimension_numbers<[1], [0], [0], [1], [0, 0, 1, 1], [], []>} : vector<8x8xbf16>, vector<8x32xbf16>, vector<8x32xf32> -> vector<8x32xf32>
    %403 = arith.addf %357, %402 : vector<8x32xf32>
    %404 = vector.extract_strided_slice %379 {offsets = [8, 0], sizes = [8, 8], strides = [1, 1]} : vector<16x8xbf16> to vector<8x8xbf16>
    %405 = vector.extract_strided_slice %380 {offsets = [16, 0], sizes = [16, 8], strides = [1, 1]} : vector<32x8xbf16> to vector<16x8xbf16>
    %cst_115 = arith.constant dense<0.000000e+00> : vector<8x16xf32>
    %406 = tpu.matmul %404, %405, %cst_115 {dimension_numbers = #tpu.dot_dimension_numbers<[1], [1], [0], [0], [0, 0, 1, 0], [], []>} : vector<8x8xbf16>, vector<16x8xbf16>, vector<8x16xf32> -> vector<8x16xf32>
    %cst_116 = arith.constant 0.353553385 : f32
    %407 = vector.broadcast %cst_116 : f32 to vector<8x16xf32>
    %408 = arith.mulf %406, %407 : vector<8x16xf32>
    %cst_117 = arith.constant dense<0xFF800000> : vector<8xf32>
    %409 = vector.multi_reduction <maximumf>, %408, %cst_117 [1] : vector<8x16xf32> to vector<8xf32>
    %410 = vector.shape_cast %409 : vector<8xf32> to vector<8x1xf32>
    %411 = vector.broadcast %410 : vector<8x1xf32> to vector<8x16xf32>
    %412 = arith.subf %408, %411 : vector<8x16xf32>
    %413 = math.exp %412 : vector<8x16xf32>
    %cst_118 = arith.constant dense<0.000000e+00> : vector<8xf32>
    %414 = vector.multi_reduction <add>, %413, %cst_118 [1] : vector<8x16xf32> to vector<8xf32>
    %415 = vector.shape_cast %414 : vector<8xf32> to vector<8x1xf32>
    %416 = tpu.reciprocal %415 {approx = true} : vector<8x1xf32> -> vector<8x1xf32>
    %417 = vector.broadcast %416 : vector<8x1xf32> to vector<8x16xf32>
    %418 = arith.mulf %413, %417 : vector<8x16xf32>
    %419 = arith.truncf %418 : vector<8x16xf32> to vector<8x16xbf16>
    %420 = vector.extract_strided_slice %381 {offsets = [16, 0], sizes = [16, 8], strides = [1, 1]} : vector<32x8xbf16> to vector<16x8xbf16>
    %cst_119 = arith.constant dense<0.000000e+00> : vector<8x8xf32>
    %421 = tpu.matmul %419, %420, %cst_119 {dimension_numbers = #tpu.dot_dimension_numbers<[1], [0], [0], [1], [0, 0, 1, 1], [], []>} : vector<8x16xbf16>, vector<16x8xbf16>, vector<8x8xf32> -> vector<8x8xf32>
    %422 = arith.truncf %421 : vector<8x8xf32> to vector<8x8xbf16>
    %cst_120 = arith.constant dense<0.000000e+00> : vector<8x32xf32>
    %423 = tpu.matmul %422, %382, %cst_120 {dimension_numbers = #tpu.dot_dimension_numbers<[1], [0], [0], [1], [0, 0, 1, 1], [], []>} : vector<8x8xbf16>, vector<8x32xbf16>, vector<8x32xf32> -> vector<8x32xf32>
    %424 = arith.addf %378, %423 : vector<8x32xf32>
    %c0_121 = arith.constant 0 : index
    %c0_122 = arith.constant 0 : index
    %425 = vector.load %arg10[%c0_121, %c0_122] : memref<16x32xf32, #tpu.memory_space<vmem>>, vector<8x32xf32>
    tpu.vector_store %arg10[%c0_121, %c0_122], %403 {strides = array<i32>} : memref<16x32xf32, #tpu.memory_space<vmem>>, vector<8x32xf32>,
    %c8_123 = arith.constant 8 : index
    %c0_124 = arith.constant 0 : index
    %426 = vector.load %arg10[%c8_123, %c0_124] : memref<16x32xf32, #tpu.memory_space<vmem>>, vector<8x32xf32>
    tpu.vector_store %arg10[%c8_123, %c0_124], %424 {strides = array<i32>} : memref<16x32xf32, #tpu.memory_space<vmem>>, vector<8x32xf32>,
    %c0_125 = arith.constant 0 : index
    %c0_126 = arith.constant 0 : index
    %427 = vector.load %arg10[%c0_125, %c0_126] : memref<16x32xf32, #tpu.memory_space<vmem>>, vector<16x32xf32>
    %428 = vector.broadcast %242 : vector<1x32xf32> to vector<16x32xf32>
    %429 = arith.addf %427, %428 : vector<16x32xf32>
    %430 = arith.addf %223, %429 : vector<16x32xf32>
    %cst_127 = arith.constant dense<0.000000e+00> : vector<16xf32>
    %431 = vector.multi_reduction <add>, %430, %cst_127 [1] : vector<16x32xf32> to vector<16xf32>
    %432 = vector.shape_cast %431 : vector<16xf32> to vector<16x1xf32>
    %cst_128 = arith.constant 3.200000e+01 : f32
    %433 = vector.broadcast %cst_128 : f32 to vector<16x1xf32>
    %434 = arith.divf %432, %433 : vector<16x1xf32>
    %435 = vector.broadcast %434 : vector<16x1xf32> to vector<16x32xf32>
    %436 = arith.subf %430, %435 : vector<16x32xf32>
    %437 = arith.mulf %436, %436 : vector<16x32xf32>
    %cst_129 = arith.constant dense<0.000000e+00> : vector<16xf32>
    %438 = vector.multi_reduction <add>, %437, %cst_129 [1] : vector<16x32xf32> to vector<16xf32>
    %439 = vector.shape_cast %438 : vector<16xf32> to vector<16x1xf32>
    %cst_130 = arith.constant 3.200000e+01 : f32
    %440 = vector.broadcast %cst_130 : f32 to vector<16x1xf32>
    %441 = arith.divf %439, %440 : vector<16x1xf32>
    %cst_131 = arith.constant 9.99999974E-6 : f32
    %442 = vector.broadcast %cst_131 : f32 to vector<16x1xf32>
    %443 = arith.addf %441, %442 : vector<16x1xf32>
    %444 = math.rsqrt %443 : vector<16x1xf32>
    %445 = vector.broadcast %444 : vector<16x1xf32> to vector<16x32xf32>
    %446 = arith.mulf %436, %445 : vector<16x32xf32>
    %447 = vector.extract_strided_slice %0 {offsets = [6, 0], sizes = [1, 32], strides = [1, 1]} : vector<12x128xf32> to vector<1x32xf32>
    %448 = vector.broadcast %447 : vector<1x32xf32> to vector<16x32xf32>
    %449 = arith.mulf %446, %448 : vector<16x32xf32>
    %450 = vector.extract_strided_slice %0 {offsets = [7, 0], sizes = [1, 32], strides = [1, 1]} : vector<12x128xf32> to vector<1x32xf32>
    %451 = vector.broadcast %450 : vector<1x32xf32> to vector<16x32xf32>
    %452 = arith.addf %449, %451 : vector<16x32xf32>
    %453 = arith.truncf %452 : vector<16x32xf32> to vector<16x32xbf16>
    %c0_132 = arith.constant 0 : index
    %c0_133 = arith.constant 0 : index
    %454 = vector.load %arg6[%c0_132, %c0_133] : memref<32x64xbf16, #tpu.memory_space<vmem>>, vector<32x64xbf16>
    %cst_134 = arith.constant dense<0.000000e+00> : vector<16x64xf32>
    %455 = tpu.matmul %453, %454, %cst_134 {dimension_numbers = #tpu.dot_dimension_numbers<[1], [0], [0], [1], [0, 0, 1, 1], [], []>} : vector<16x32xbf16>, vector<32x64xbf16>, vector<16x64xf32> -> vector<16x64xf32>
    %456 = vector.extract_strided_slice %0 {offsets = [8, 0], sizes = [1, 64], strides = [1, 1]} : vector<12x128xf32> to vector<1x64xf32>
    %457 = vector.broadcast %456 : vector<1x64xf32> to vector<16x64xf32>
    %458 = arith.addf %455, %457 : vector<16x64xf32>
    %cst_135 = arith.constant 0.000000e+00 : f32
    %459 = vector.broadcast %cst_135 : f32 to vector<16x64xf32>
    %460 = arith.maximumf %458, %459 : vector<16x64xf32>
    %461 = arith.truncf %460 : vector<16x64xf32> to vector<16x64xbf16>
    %c0_136 = arith.constant 0 : index
    %c0_137 = arith.constant 0 : index
    %462 = vector.load %arg7[%c0_136, %c0_137] : memref<64x32xbf16, #tpu.memory_space<vmem>>, vector<64x32xbf16>
    %cst_138 = arith.constant dense<0.000000e+00> : vector<16x32xf32>
    %463 = tpu.matmul %461, %462, %cst_138 {dimension_numbers = #tpu.dot_dimension_numbers<[1], [0], [0], [1], [0, 0, 1, 1], [], []>} : vector<16x64xbf16>, vector<64x32xbf16>, vector<16x32xf32> -> vector<16x32xf32>
    %464 = vector.extract_strided_slice %0 {offsets = [9, 0], sizes = [1, 32], strides = [1, 1]} : vector<12x128xf32> to vector<1x32xf32>
    %465 = vector.broadcast %464 : vector<1x32xf32> to vector<16x32xf32>
    %466 = arith.addf %463, %465 : vector<16x32xf32>
    %467 = arith.addf %452, %466 : vector<16x32xf32>
    %cst_139 = arith.constant dense<0.000000e+00> : vector<16xf32>
    %468 = vector.multi_reduction <add>, %467, %cst_139 [1] : vector<16x32xf32> to vector<16xf32>
    %469 = vector.shape_cast %468 : vector<16xf32> to vector<16x1xf32>
    %cst_140 = arith.constant 3.200000e+01 : f32
    %470 = vector.broadcast %cst_140 : f32 to vector<16x1xf32>
    %471 = arith.divf %469, %470 : vector<16x1xf32>
    %472 = vector.broadcast %471 : vector<16x1xf32> to vector<16x32xf32>
    %473 = arith.subf %467, %472 : vector<16x32xf32>
    %474 = arith.mulf %473, %473 : vector<16x32xf32>
    %cst_141 = arith.constant dense<0.000000e+00> : vector<16xf32>
    %475 = vector.multi_reduction <add>, %474, %cst_141 [1] : vector<16x32xf32> to vector<16xf32>
    %476 = vector.shape_cast %475 : vector<16xf32> to vector<16x1xf32>
    %cst_142 = arith.constant 3.200000e+01 : f32
    %477 = vector.broadcast %cst_142 : f32 to vector<16x1xf32>
    %478 = arith.divf %476, %477 : vector<16x1xf32>
    %cst_143 = arith.constant 9.99999974E-6 : f32
    %479 = vector.broadcast %cst_143 : f32 to vector<16x1xf32>
    %480 = arith.addf %478, %479 : vector<16x1xf32>
    %481 = math.rsqrt %480 : vector<16x1xf32>
    %482 = vector.broadcast %481 : vector<16x1xf32> to vector<16x32xf32>
    %483 = arith.mulf %473, %482 : vector<16x32xf32>
    %484 = vector.extract_strided_slice %0 {offsets = [10, 0], sizes = [1, 32], strides = [1, 1]} : vector<12x128xf32> to vector<1x32xf32>
    %485 = vector.broadcast %484 : vector<1x32xf32> to vector<16x32xf32>
    %486 = arith.mulf %483, %485 : vector<16x32xf32>
    %487 = vector.extract_strided_slice %0 {offsets = [11, 0], sizes = [1, 32], strides = [1, 1]} : vector<12x128xf32> to vector<1x32xf32>
    %488 = vector.broadcast %487 : vector<1x32xf32> to vector<16x32xf32>
    %489 = arith.addf %486, %488 : vector<16x32xf32>
    %c0_144 = arith.constant 0 : index
    %c0_145 = arith.constant 0 : index
    %490 = vector.load %arg9[%c0_144, %c0_145] : memref<16x32xf32, #tpu.memory_space<vmem>>, vector<16x32xf32>
    tpu.vector_store %arg9[%c0_144, %c0_145], %489 {strides = array<i32>} : memref<16x32xf32, #tpu.memory_space<vmem>>, vector<16x32xf32>,
    return
  }
}

</mosaic_0001>

<bundles_post_ra>
// kernel: tpu_custom_call.1
= control target key start
LH: loop header
LB: loop body
LE: loop exit
PB: predicated region body
PF: predicated region fallthrough
CT: control target
= control target key end

     0   :  { %14 = vsyncpa [#allocation4], 0  ;;  %s4524_s0 = inlined_call_operand.vmem [shape: f32[16,32], index: 0, kind: input, shape index: {}]   ;;  %s4525_s1 = inlined_call_operand.vmem [shape: bf16[32,32], index: 1, kind: input, shape index: {}]   ;;  %s4526_s2 = inlined_call_operand.vmem [shape: bf16[32,96], index: 2, kind: input, shape index: {}]   ;;  %s4527_s3 = inlined_call_operand.hbm [shape: bf16[32,32], index: 3, kind: input, shape index: {}]   ;;  %s4528_s4 = inlined_call_operand.hbm [shape: bf16[32,96], index: 4, kind: input, shape index: {}]   ;;  %s4529_s5 = inlined_call_operand.hbm [shape: bf16[32,32], index: 5, kind: input, shape index: {}]   ;;  %s4530_s6 = inlined_call_operand.hbm [shape: bf16[32,64], index: 6, kind: input, shape index: {}]   ;;  %s4531_s7 = inlined_call_operand.vmem [shape: bf16[64,32], index: 7, kind: input, shape index: {}]   ;;  %s4532_s8 = inlined_call_operand.hbm [shape: f32[12,128], index: 8, kind: input, shape index: {}]   ;;  %s4533_s9 = inlined_call_operand.hbm [shape: f32[16,32], index: 9, kind: output, shape index: {}]  }
   0x1   :  { %15 = vsyncpa [#allocation7], 0 }
   0x2   :  { %16 = vsyncpa [#allocation10], 0 }
   0x3   :  { %17 = vsyncpa [#allocation5], 0  ;;  %s3883_s30 = smov [#allocation6]   ;;  %s3884_s11 = smov [#allocation9]  }
   0x4   :  { %s41_s10 = sshll.u32 %s3883_s30, 4  ;;  %s65_s12 = sshll.u32 %s3884_s11, 4  ;;  %s42_s10 = int_to_ptr.vmem [resolvable:$true] %s41_s10  ;;  %s66_s12 = int_to_ptr.vmem [resolvable:$true] %s65_s12 }
   0x5   :  { %s3763_s13 = scalar_lea.vmem %s42_s10, 256  ;;  %p3768_p1 = scmp.lt.s32.totalorder %s42_s10, %s42_s10 }
   0x6   :  { %p3764_p0 = scmp.ne.s32.totalorder %s42_s10, %s3763_s13  ;;  %p3769_p2 = scmp.lt.s32.totalorder %s3763_s13, %s3763_s13 }
   0x8   :  { %p3770_p3 = por %p3769_p2, %p3768_p1 }
   0xa   :  { %p3771_p4 = pnand %p3770_p3, %p3764_p0 }
   0xc   :  { %3774 = shalt.err (!%p3771_p4)
}
   0xd   :  { %s3885_s14 = smov 64   ;;  %s3886_s15 = smov 4  }
   0xe   :  { %47 = dma.hbm_to_vmem [thread:$0]  %s4528_s4, 256, %s42_s10, [#allocation7], %s3885_s14, %s3885_s14, %s3886_s15  }
   0xf   :  { %s3783_s18 = scalar_lea.vmem %s66_s12, 256  ;;  %p3788_p6 = scmp.lt.s32.totalorder %s66_s12, %s66_s12 }
  0x10   :  { %p3784_p5 = scmp.ne.s32.totalorder %s66_s12, %s3783_s18  ;;  %p3789_p7 = scmp.lt.s32.totalorder %s3783_s18, %s3783_s18 }
  0x12   :  { %p3790_p8 = por %p3789_p7, %p3788_p6 }
  0x14   :  { %p3791_p9 = pnand %p3790_p8, %p3784_p5 }
  0x16   :  { %3794 = shalt.err (!%p3791_p9)
}
  0x17   :  { %71 = dma.hbm_to_vmem [thread:$0]  %s4530_s6, 256, %s66_s12, [#allocation10], %s3885_s14, %s3885_s14, %s3886_s15  }
  0x18   :  { %s3887_s21 = smov [#allocation3]   ;;  %s3888_s23 = smov [#allocation8]  }
  0x19   :  { %s29_s22 = sshll.u32 %s3887_s21, 4  ;;  %s53_s24 = sshll.u32 %s3888_s23, 4  ;;  %s30_s22 = int_to_ptr.vmem [resolvable:$true] %s29_s22  ;;  %s54_s24 = int_to_ptr.vmem [resolvable:$true] %s53_s24 }
  0x1a   :  { %s3803_s4 = scalar_lea.vmem %s30_s22, 256  ;;  %p3808_p11 = scmp.lt.s32.totalorder %s30_s22, %s30_s22 }
  0x1b   :  { %p3804_p10 = scmp.ne.s32.totalorder %s30_s22, %s3803_s4  ;;  %p3809_p12 = scmp.lt.s32.totalorder %s3803_s4, %s3803_s4 }
  0x1d   :  { %p3810_p13 = por %p3809_p12, %p3808_p11 }
  0x1f   :  { %p3811_p0 = pnand %p3810_p13, %p3804_p10 }
  0x21   :  { %3814 = shalt.err (!%p3811_p0)
}
  0x22   :  { %35 = dma.hbm_to_vmem [thread:$0]  %s4527_s3, 256, %s30_s22, [#allocation4], %s3885_s14, %s3885_s14, %s3886_s15  }
  0x23   :  { %s3823_s6 = scalar_lea.vmem %s54_s24, 256  ;;  %p3828_p2 = scmp.lt.s32.totalorder %s54_s24, %s54_s24 }
  0x24   :  { %p3824_p1 = scmp.ne.s32.totalorder %s54_s24, %s3823_s6  ;;  %p3829_p3 = scmp.lt.s32.totalorder %s3823_s6, %s3823_s6 }
  0x26   :  { %p3830_p4 = por %p3829_p3, %p3828_p2 }
  0x28   :  { %p3831_p5 = pnand %p3830_p4, %p3824_p1 }
  0x2a   :  { %3834 = shalt.err (!%p3831_p5)
}
  0x2b   :  { %59 = dma.hbm_to_vmem [thread:$0]  %s4529_s5, 256, %s54_s24, [#allocation7], %s3885_s14, %s3885_s14, %s3886_s15  }
  0x2c   :  { %s3889_s29 = smov [#allocation11]  }
  0x2d   :  { %s79_s30 = sshll.u32 %s3889_s29, 4  ;;  %s80_s30 = int_to_ptr.vmem [resolvable:$true] %s79_s30 }
  0x2e   :  { %s3843_s10 = scalar_lea.vmem %s80_s30, 256  ;;  %p3848_p7 = scmp.lt.s32.totalorder %s80_s30, %s80_s30 }
  0x2f   :  { %p3844_p6 = scmp.ne.s32.totalorder %s80_s30, %s3843_s10  ;;  %p3849_p8 = scmp.lt.s32.totalorder %s3843_s10, %s3843_s10 }
  0x31   :  { %p3850_p9 = por %p3849_p8, %p3848_p7 }
  0x33   :  { %p3851_p10 = pnand %p3850_p9, %p3844_p6 }
  0x35   :  { %3854 = shalt.err (!%p3851_p10)
}
  0x36   :  { %s3890_s3 = smov 128   ;;  %s3891_s11 = smov 8  }
  0x37   :  { %85 = dma.hbm_to_vmem [thread:$0]  %s4532_s8, 256, %s80_s30, [#allocation10], %s3890_s3, %s3890_s3, %s3891_s11  }
  0x38   :  { %3875 = dma.done.wait [#allocation4], 256  }
  0x39   :  { %3876 = vsyncadd [#allocation4], 4294967040 }
  0x3a   :  { %3877 = dma.done.wait [#allocation7], 512  }
  0x3b   :  { %3878 = vsyncadd [#allocation7], 4294966784 }
  0x3c   :  { %3879 = dma.done.wait [#allocation10], 512  }
  0x3d   :  { %3880 = vsyncadd [#allocation10], 4294966784  ;;  %v3892_v0 = vmov 0.0   ;;  %vm3893_vm0 = vmmov 0   ;;  %v3666_v1 = vld [vmem:[%s4526_s2 + $0x8] sm:$0xff]   ;;  %v3667_v2 = vld [vmem:[%s4526_s2] sm:$0xff]   ;;  %v111_v6 = vlaneseq }
  0x3e   :  { %3312 = vmatprep.subr.bf16.mxu1 %v3892_v0  ;;  %3316 = vmatprep.mubr.msk.bf16.mxu1 %vm3893_vm0, %v3892_v0  ;;  %v4000_v3 = vld [vmem:[%s4524_s0] sm:$0xff]  ;;  %v4005_v4 = vld [vmem:[%s4524_s0 + $0x8] sm:$0xff]  ;;  %vm127_vm1 = vcmask 261120   ;;  %v4017_v9 = vld [vmem:[#allocation11] sm:$0xff]  ;;  %s3894_s0 = smov 88   ;;  %s3895_s2 = smov 96  }
  0x3f   :  { %3326 = vmatprep.subr.bf16.mxu0 %v3892_v0  ;;  %3328 = vmatprep.mubr.msk.bf16.mxu0 %vm3893_vm0, %v3892_v0  ;;  %v106_v5 = vpack.c.bf16 %v4005_v4, %v4000_v3  ;;  %v4014_v7 = vshrl.u32 %v111_v6, 7  ;;  %s3896_s21 = smov 120   ;;  %vm180_vm2 = vcmask 64512   ;;  %vm245_vm3 = vcmask 1043456   ;;  %s3897_s22 = smov 56  }
  0x40   :  { %3313 = vmatpush3.bf16.msra.mxu1 %v3666_v1  ;;  %s3899_s23 = smov 112   ;;  %s3900_s24 = smov 48   ;;  %vm1682_vm4 = vcmask 130048   ;;  %vm3026_vm5 = vcmask 523264  }
  0x41   :  { %3314 = vmatprep.subr.bf16.mxu1 %v3892_v0  ;;  %v113_v8 = vsub.s32 0, %v4014_v7  ;;  %s3901_s4 = smov 72   ;;  %s3902_s25 = smov 104  }
  0x42   :  { %s3903_s26 = smov 40  }
  0x43   :  { %v114_v11 = vrot.slane %v4017_v9, %v113_v8 }
  0x44   :  { %3315 = vmatpush3.bf16.msra.mxu1 %v3667_v2 }
  0x45   :  { %3320 = vmatprep.subr.bf16.mxu1 %v3892_v0 }
  0x47   :  { %3317 = vmatmul.mubr.msk.bf16.vlgmr.msra.gmra.mxu1 %vm127_vm1, %v106_v5 }
  0x48   :  { %3322 = vmatprep.mubr.msk.bf16.mxu1 %vm3893_vm0, %v3892_v0 }
 0x107   :  { %v165_v10 = vpop.f32.mrf.mxu1 }
 0x108   :  { %v166_v14 = vadd.f32 %v165_v10, %v114_v11 }
 0x109   :  { %v3318_v12 = vpop.f32.mrf.mxu1 }
 0x10b   :  { %v168_v13 = vpop.f32.mrf.mxu1 }
 0x10c   :  { %v169_v15 = vadd.f32 %v168_v13, %v114_v11 }
 0x10d   :  { %v3319_v16 = vpop.f32.mrf.mxu1 }
 0x10e   :  { %v4022_v17 = vpack.c.bf16 %v169_v15, %v166_v14 }
 0x110   :  { %403 = vrot.lane.b32.xlu1 %v4022_v17, %s3894_s0  ;;  %178 = vrot.lane.b32.xlu0 %v4022_v17, %s3895_s2  ;;  %v4029_v18 = vrot.slane %v4022_v17, 4 }
 0x114   :  { %401 = vrot.lane.b32.xlu1 %v4022_v17, %s3896_s21  ;;  %291 = vrot.lane.b32.xlu0 %v4029_v18, %s3895_s2 }
 0x182   :  { %v179_v19 = vpop.permute.xlu0 %178  ;;  %v404_v23 = vpop.permute.xlu1 %403 }
 0x183   :  { %v185_v20 = vsel %vm180_vm2, %v179_v19, 0  ;;  %v409_v24 = vsel %vm180_vm2, %v404_v23, 0  ;;  %v174_v23 = vld [vmem:[#allocation3 + $0x4] sm:$0xf] }
 0x184   :  { %3321 = vmatpush3.bf16.xpose.msra.mxu1 %v185_v20 }
 0x185   :  { %3332 = vmatprep.subr.bf16.mxu1 %v3892_v0 }
 0x186   :  { %v292_v21 = vpop.permute.xlu0 %291  ;;  %v402_v25 = vpop.permute.xlu1 %401 }
 0x187   :  { %v297_v22 = vsel %vm180_vm2, %v292_v21, 0  ;;  %v173_v21 = vld [vmem:[#allocation3] sm:$0xf] }
 0x18b   :  { %3323 = vmatmul.mubr.msk.bf16.vlgmr.msra.gmra.mxu1 %vm180_vm2, %v4022_v17 }
 0x18c   :  { %3333 = vmatpush3.bf16.xpose.msra.mxu1 %v297_v22  ;;  %3334 = vmatprep.mubr.msk.bf16.mxu1 %vm3893_vm0, %v3892_v0  ;;  %v4084_v22 = vsel %vm245_vm3, %v173_v21, 0 }
 0x18d   :  { %3344 = vmatprep.subr.bf16.mxu1 %v3892_v0 }
 0x193   :  { %3335 = vmatmul.mubr.msk.bf16.vlgmr.msra.gmra.mxu1 %vm180_vm2, %v4029_v18 }
 0x194   :  { %3345 = vmatpush3.bf16.xpose.msra.mxu1 %v409_v24  ;;  %3346 = vmatprep.mubr.msk.bf16.mxu1 %vm3893_vm0, %v3892_v0  ;;  %v517_v24 = vsel %vm245_vm3, %v174_v23, 0 }
 0x195   :  { %3356 = vmatprep.subr.bf16.mxu1 %v3892_v0 }
 0x19b   :  { %3347 = vmatmul.mubr.msk.bf16.vlgmr.msra.gmra.mxu1 %vm180_vm2, %v402_v25 }
 0x19c   :  { %3358 = vmatprep.mubr.msk.bf16.mxu1 %vm3893_vm0, %v3892_v0  ;;  %3357 = vmatpush3.bf16.msra.mxu1 %v517_v24 }
 0x19d   :  { %3368 = vmatprep.subr.bf16.mxu1 %v3892_v0 }
 0x24b   :  { %v221_v26 = vpop.f32.mrf.mxu1 }
 0x24c   :  { %v227_v27 = vmul.f32 0.35355338, %v221_v26 }
 0x24d   :  { %v3324_v28 = vpop.f32.mrf.mxu1 }
 0x24e   :  { %v228_v29 = vsel %vm180_vm2, %v227_v27, -inf }
 0x24f   :  { %v224_v30 = vpop.f32.mrf.mxu1  ;;  %229 = vmax.xlane.f32.xlu0 %v228_v29 }
 0x251   :  { %v3325_v31 = vpop.f32.mrf.mxu1 }
 0x253   :  { %v333_v32 = vpop.f32.mrf.mxu1 }
 0x254   :  { %v339_v33 = vmul.f32 0.35355338, %v333_v32 }
 0x255   :  { %v3336_v34 = vpop.f32.mrf.mxu1 }
 0x256   :  { %v340_v35 = vsel %vm180_vm2, %v339_v33, -inf }
 0x257   :  { %341 = vmax.xlane.f32.xlu1 %v340_v35  ;;  %v336_v36 = vpop.f32.mrf.mxu1 }
 0x259   :  { %v3337_v37 = vpop.f32.mrf.mxu1 }
 0x25b   :  { %v445_v38 = vpop.f32.mrf.mxu1 }
 0x25c   :  { %v451_v39 = vmul.f32 0.35355338, %v445_v38 }
 0x25d   :  { %v3348_v40 = vpop.f32.mrf.mxu1 }
 0x25e   :  { %v452_v41 = vsel %vm180_vm2, %v451_v39, -inf }
 0x25f   :  { %453 = vmax.xlane.f32.xlu0 %v452_v41  ;;  %v448_v42 = vpop.f32.mrf.mxu1 }
 0x261   :  { %v3349_v43 = vpop.f32.mrf.mxu1 }
 0x268   :  { %240 = vrot.lane.b32.xlu1 %v4022_v17, %s3885_s14 }
 0x2d8   :  { %v230_v44 = vpop.xlane.xlu0 %229 }
 0x2d9   :  { %v231_v45 = vsub.f32 %v227_v27, %v230_v44 }
 0x2db   :  { %v232_v46 = vmul.f32 1.442695, %v231_v45 }
 0x2dd   :  { %3678 = vpow2.f32 %v232_v46 }
 0x2e0   :  { %v342_v47 = vpop.xlane.xlu1 %341 }
 0x2e1   :  { %v343_v48 = vsub.f32 %v339_v33, %v342_v47 }
 0x2e3   :  { %v344_v49 = vmul.f32 1.442695, %v343_v48 }
 0x2e4   :  { %v241_v50 = vpop.permute.xlu1 %240 }
 0x2e5   :  { %3680 = vpow2.f32 %v344_v49  ;;  %v247_v51 = vsel %vm245_vm3, %v241_v50, 0 }
 0x2e6   :  { %3327 = vmatpush3.bf16.msra.mxu0 %v247_v51 }
 0x2e7   :  { %3338 = vmatprep.subr.bf16.mxu0 %v3892_v0 }
 0x2e8   :  { %v454_v52 = vpop.xlane.xlu0 %453 }
 0x2e9   :  { %v455_v53 = vsub.f32 %v451_v39, %v454_v52 }
 0x2ea   :  { %v3679_v54 = vpop.eup %3678 }
 0x2eb   :  { %v456_v55 = vmul.f32 1.442695, %v455_v53  ;;  %v234_v56 = vsel %vm180_vm2, %v3679_v54, 0.0 }
 0x2ec   :  { %235 = vadd.xlane.f32.xlu0 %v234_v56 }
 0x2ed   :  { %3682 = vpow2.f32 %v456_v55 }
 0x2f2   :  { %v3681_v57 = vpop.eup %3680 }
 0x2f3   :  { %v346_v58 = vsel %vm180_vm2, %v3681_v57, 0.0 }
 0x2f4   :  { %347 = vadd.xlane.f32.xlu1 %v346_v58 }
 0x2fa   :  { %v3683_v59 = vpop.eup %3682 }
 0x2fb   :  { %v458_v60 = vsel %vm180_vm2, %v3683_v59, 0.0 }
 0x2fc   :  { %459 = vadd.xlane.f32.xlu0 %v458_v60 }
 0x305   :  { %464 = vrot.lane.b32.xlu1 %v4022_v17, %s3897_s22 }
 0x309   :  { %607 = vrot.lane.b32.xlu1 %v4029_v18, %s3894_s0 }
 0x312   :  { %352 = vrot.lane.b32.xlu0 %v4029_v18, %s3885_s14  ;;  %s3898_s14 = smov 80  }
 0x316   :  { %605 = vrot.lane.b32.xlu0 %v4029_v18, %s3896_s21 }
 0x375   :  { %v236_v61 = vpop.xlane.xlu0 %235 }
 0x376   :  { %3684 = vrcp.f32 %v236_v61 }
 0x37d   :  { %v348_v62 = vpop.xlane.xlu1 %347 }
 0x37e   :  { %3686 = vrcp.f32 %v348_v62 }
 0x381   :  { %v465_v13 = vpop.permute.xlu1 %464 }
 0x382   :  { %v470_v15 = vsel %vm245_vm3, %v465_v13, 0 }
 0x383   :  { %v3685_v63 = vpop.eup %3684 }
 0x384   :  { %v238_v1 = vmul.f32 %v3685_v63, %v3679_v54 }
 0x385   :  { %v460_v2 = vpop.xlane.xlu0 %459  ;;  %v608_v34 = vpop.permute.xlu1 %607 }
 0x386   :  { %3688 = vrcp.f32 %v460_v2  ;;  %v239_v5 = vpack.c.bf16 %v238_v1, %v238_v1  ;;  %v613_v38 = vsel %vm180_vm2, %v608_v34, 0 }
 0x388   :  { %3329 = vmatmul.mubr.msk.bf16.vlgmr.msra.gmra.mxu0 %vm180_vm2, %v239_v5 }
 0x389   :  { %v353_v6 = vpop.permute.xlu0 %352  ;;  %3340 = vmatprep.mubr.msk.bf16.mxu0 %vm3893_vm0, %v3892_v0 }
 0x38a   :  { %v358_v10 = vsel %vm245_vm3, %v353_v6, 0 }
 0x38b   :  { %v3687_v11 = vpop.eup %3686  ;;  %3339 = vmatpush3.bf16.msra.mxu0 %v358_v10 }
 0x38c   :  { %3350 = vmatprep.subr.bf16.mxu0 %v3892_v0  ;;  %v350_v12 = vmul.f32 %v3687_v11, %v3681_v57 }
 0x38d   :  { %v606_v41 = vpop.permute.xlu0 %605 }
 0x38e   :  { %v351_v14 = vpack.c.bf16 %v350_v12, %v350_v12 }
 0x390   :  { %3341 = vmatmul.mubr.msk.bf16.vlgmr.msra.gmra.mxu0 %vm180_vm2, %v351_v14 }
 0x391   :  { %3351 = vmatpush3.bf16.msra.mxu0 %v470_v15  ;;  %3352 = vmatprep.mubr.msk.bf16.mxu0 %vm3893_vm0, %v3892_v0 }
 0x392   :  { %3362 = vmatprep.subr.bf16.mxu0 %v3892_v0 }
 0x393   :  { %v3689_v16 = vpop.eup %3688 }
 0x394   :  { %v462_v19 = vmul.f32 %v3689_v16, %v3683_v59 }
 0x396   :  { %v463_v20 = vpack.c.bf16 %v462_v19, %v462_v19 }
 0x398   :  { %3353 = vmatmul.mubr.msk.bf16.vlgmr.msra.gmra.mxu0 %vm180_vm2, %v463_v20 }
 0x399   :  { %3364 = vmatprep.mubr.msk.bf16.mxu0 %vm3893_vm0, %v3892_v0  ;;  %3363 = vmatpush3.bf16.msra.mxu0 %v4084_v22 }
 0x39a   :  { %3374 = vmatprep.subr.bf16.mxu0 %v3892_v0 }
 0x448   :  { %v283_v25 = vpop.f32.mrf.mxu0 }
 0x449   :  { %v289_v26 = vpack.c.bf16 %v283_v25, %v283_v25 }
 0x44a   :  { %v3330_v27 = vpop.f32.mrf.mxu0 }
 0x44b   :  { %3365 = vmatmul.mubr.msk.bf16.vlgmr.msra.gmra.mxu0 %vm180_vm2, %v289_v26 }
 0x44c   :  { %v286_v28 = vpop.f32.mrf.mxu0  ;;  %3376 = vmatprep.mubr.msk.bf16.mxu0 %vm3893_vm0, %v3892_v0 }
 0x44e   :  { %v3331_v29 = vpop.f32.mrf.mxu0 }
 0x450   :  { %v4093_v30 = vpop.f32.mrf.mxu0 }
 0x451   :  { %v400_v10 = vpack.c.bf16 %v4093_v30, %v4093_v30 }
 0x452   :  { %v3342_v31 = vpop.f32.mrf.mxu0 }
 0x454   :  { %v397_v32 = vpop.f32.mrf.mxu0 }
 0x456   :  { %v3343_v33 = vpop.f32.mrf.mxu0 }
 0x458   :  { %v506_v35 = vpop.f32.mrf.mxu0 }
 0x459   :  { %v512_v36 = vpack.c.bf16 %v506_v35, %v506_v35 }
 0x45a   :  { %v3354_v37 = vpop.f32.mrf.mxu0 }
 0x45b   :  { %3359 = vmatmul.mubr.msk.bf16.vlgmr.msra.gmra.mxu1 %vm180_vm2, %v512_v36 }
 0x45c   :  { %3369 = vmatpush3.bf16.xpose.msra.mxu1 %v613_v38  ;;  %v509_v39 = vpop.f32.mrf.mxu0  ;;  %3370 = vmatprep.mubr.msk.bf16.mxu1 %vm3893_vm0, %v3892_v0 }
 0x45d   :  { %3380 = vmatprep.subr.bf16.mxu1 %v3892_v0 }
 0x45e   :  { %v3355_v40 = vpop.f32.mrf.mxu0 }
 0x463   :  { %3371 = vmatmul.mubr.msk.bf16.vlgmr.msra.gmra.mxu1 %vm180_vm2, %v606_v41 }
 0x464   :  { %3381 = vmatpush3.bf16.msra.mxu1 %v517_v24  ;;  %3382 = vmatprep.mubr.msk.bf16.mxu1 %vm3893_vm0, %v3892_v0 }
 0x465   :  { %3392 = vmatprep.subr.bf16.mxu1 %v3892_v0 }
 0x50b   :  { %v599_v42 = vpop.f32.mrf.mxu0 }
 0x50d   :  { %v3366_v43 = vpop.f32.mrf.mxu0 }
 0x50f   :  { %v602_v44 = vpop.f32.mrf.mxu0 }
 0x511   :  { %v3367_v45 = vpop.f32.mrf.mxu0 }
 0x51b   :  { %v553_v46 = vpop.f32.mrf.mxu1 }
 0x51c   :  { %v4104_v47 = vadd.f32 %v599_v42, %v553_v46 }
 0x51d   :  { %v3360_v48 = vpop.f32.mrf.mxu1 }
 0x51f   :  { %v556_v49 = vpop.f32.mrf.mxu1 }
 0x521   :  { %v3361_v50 = vpop.f32.mrf.mxu1 }
 0x522   :  { %v175_v50 = vld [vmem:[#allocation3 + $0x8] sm:$0xf] }
 0x523   :  { %v649_v51 = vpop.f32.mrf.mxu1 }
 0x524   :  { %v655_v52 = vmul.f32 0.35355338, %v649_v51  ;;  %v919_v51 = vsel %vm245_vm3, %v175_v50, 0 }
 0x525   :  { %v3372_v53 = vpop.f32.mrf.mxu1 }
 0x526   :  { %v656_v54 = vsel %vm180_vm2, %v655_v52, -inf }
 0x527   :  { %657 = vmax.xlane.f32.xlu1 %v656_v54  ;;  %v652_v55 = vpop.f32.mrf.mxu1 }
 0x529   :  { %v3373_v56 = vpop.f32.mrf.mxu1 }
 0x538   :  { %805 = vrot.lane.b32.xlu1 %v4022_v17, %s3898_s14 }
 0x53c   :  { %803 = vrot.lane.b32.xlu1 %v4022_v17, %s3899_s23 }
 0x5b0   :  { %v658_v57 = vpop.xlane.xlu1 %657 }
 0x5b1   :  { %v659_v58 = vsub.f32 %v655_v52, %v658_v57 }
 0x5b3   :  { %v660_v59 = vmul.f32 1.442695, %v659_v58 }
 0x5b4   :  { %v806_v11 = vpop.permute.xlu1 %805 }
 0x5b5   :  { %3690 = vpow2.f32 %v660_v59  ;;  %v811_v15 = vsel %vm180_vm2, %v806_v11, 0 }
 0x5b8   :  { %v804_v21 = vpop.permute.xlu1 %803 }
 0x5c2   :  { %v3691_v60 = vpop.eup %3690 }
 0x5c3   :  { %v662_v61 = vsel %vm180_vm2, %v3691_v60, 0.0 }
 0x5c4   :  { %663 = vadd.xlane.f32.xlu0 %v662_v61 }
 0x5da   :  { %668 = vrot.lane.b32.xlu0 %v4029_v18, %s3897_s22 }
 0x64d   :  { %v664_v62 = vpop.xlane.xlu0 %663 }
 0x64e   :  { %3692 = vrcp.f32 %v664_v62 }
 0x651   :  { %v669_v63 = vpop.permute.xlu0 %668 }
 0x652   :  { %v674_v1 = vsel %vm245_vm3, %v669_v63, 0 }
 0x653   :  { %3375 = vmatpush3.bf16.msra.mxu0 %v674_v1 }
 0x654   :  { %3386 = vmatprep.subr.bf16.mxu0 %v3892_v0 }
 0x65b   :  { %v3693_v2 = vpop.eup %3692 }
 0x65c   :  { %v666_v5 = vmul.f32 %v3693_v2, %v3691_v60 }
 0x65e   :  { %v667_v6 = vpack.c.bf16 %v666_v5, %v666_v5 }
 0x660   :  { %3377 = vmatmul.mubr.msk.bf16.vlgmr.msra.gmra.mxu0 %vm180_vm2, %v667_v6 }
 0x661   :  { %3387 = vmatpush3.bf16.msra.mxu0 %v4084_v22  ;;  %3388 = vmatprep.mubr.msk.bf16.mxu0 %vm3893_vm0, %v3892_v0 }
 0x662   :  { %3398 = vmatprep.subr.bf16.mxu0 %v3892_v0 }
 0x668   :  { %3389 = vmatmul.mubr.msk.bf16.vlgmr.msra.gmra.mxu0 %vm180_vm2, %v400_v10 }
 0x669   :  { %3400 = vmatprep.mubr.msk.bf16.mxu0 %vm3893_vm0, %v3892_v0 }
 0x720   :  { %v710_v12 = vpop.f32.mrf.mxu0 }
 0x721   :  { %v716_v13 = vpack.c.bf16 %v710_v12, %v710_v12 }
 0x722   :  { %v3378_v14 = vpop.f32.mrf.mxu0 }
 0x723   :  { %3383 = vmatmul.mubr.msk.bf16.vlgmr.msra.gmra.mxu1 %vm180_vm2, %v716_v13 }
 0x724   :  { %3393 = vmatpush3.bf16.xpose.msra.mxu1 %v811_v15  ;;  %v713_v16 = vpop.f32.mrf.mxu0  ;;  %3394 = vmatprep.mubr.msk.bf16.mxu1 %vm3893_vm0, %v3892_v0 }
 0x725   :  { %3404 = vmatprep.subr.bf16.mxu1 %v3892_v0 }
 0x726   :  { %v3379_v19 = vpop.f32.mrf.mxu0 }
 0x728   :  { %v4131_v20 = vpop.f32.mrf.mxu0 }
 0x72a   :  { %v3390_v22 = vpop.f32.mrf.mxu0 }
 0x72b   :  { %3395 = vmatmul.mubr.msk.bf16.vlgmr.msra.gmra.mxu1 %vm180_vm2, %v804_v21 }
 0x72c   :  { %v800_v23 = vpop.f32.mrf.mxu0  ;;  %3406 = vmatprep.mubr.msk.bf16.mxu1 %vm3893_vm0, %v3892_v0  ;;  %3405 = vmatpush3.bf16.msra.mxu1 %v919_v51 }
 0x72d   :  { %3416 = vmatprep.subr.bf16.mxu1 %v3892_v0 }
 0x72e   :  { %v3391_v24 = vpop.f32.mrf.mxu0 }
 0x7e3   :  { %v4136_v25 = vpop.f32.mrf.mxu1 }
 0x7e5   :  { %v3384_v26 = vpop.f32.mrf.mxu1 }
 0x7e7   :  { %v757_v27 = vpop.f32.mrf.mxu1 }
 0x7e9   :  { %v3385_v28 = vpop.f32.mrf.mxu1 }
 0x7eb   :  { %v847_v29 = vpop.f32.mrf.mxu1 }
 0x7ec   :  { %v853_v30 = vmul.f32 0.35355338, %v847_v29 }
 0x7ed   :  { %v3396_v31 = vpop.f32.mrf.mxu1 }
 0x7ee   :  { %v854_v32 = vsel %vm180_vm2, %v853_v30, -inf }
 0x7ef   :  { %855 = vmax.xlane.f32.xlu0 %v854_v32  ;;  %v850_v33 = vpop.f32.mrf.mxu1 }
 0x7f1   :  { %v3397_v34 = vpop.f32.mrf.mxu1 }
 0x805   :  { %866 = vrot.lane.b32.xlu0 %v4022_v17, %s3900_s24 }
 0x809   :  { %962 = vrot.lane.b32.xlu0 %v4029_v18, %s3899_s23 }
 0x878   :  { %v856_v35 = vpop.xlane.xlu0 %855 }
 0x879   :  { %v857_v36 = vsub.f32 %v853_v30, %v856_v35 }
 0x87b   :  { %v858_v37 = vmul.f32 1.442695, %v857_v36 }
 0x87c   :  { %v867_v38 = vpop.permute.xlu0 %866 }
 0x87d   :  { %3694 = vpow2.f32 %v858_v37  ;;  %v872_v39 = vsel %vm245_vm3, %v867_v38, 0 }
 0x87e   :  { %3399 = vmatpush3.bf16.msra.mxu0 %v872_v39 }
 0x87f   :  { %3410 = vmatprep.subr.bf16.mxu0 %v3892_v0 }
 0x880   :  { %v963_v49 = vpop.permute.xlu0 %962 }
 0x88a   :  { %v3695_v40 = vpop.eup %3694 }
 0x88b   :  { %v860_v41 = vsel %vm180_vm2, %v3695_v40, 0.0 }
 0x88c   :  { %861 = vadd.xlane.f32.xlu1 %v860_v41 }
 0x89d   :  { %964 = vrot.lane.b32.xlu1 %v4029_v18, %s3898_s14 }
 0x915   :  { %v862_v42 = vpop.xlane.xlu1 %861 }
 0x916   :  { %3696 = vrcp.f32 %v862_v42 }
 0x919   :  { %v965_v45 = vpop.permute.xlu1 %964 }
 0x91a   :  { %v970_v48 = vsel %vm180_vm2, %v965_v45, 0 }
 0x923   :  { %v3697_v43 = vpop.eup %3696 }
 0x924   :  { %v864_v44 = vmul.f32 %v3697_v43, %v3695_v40 }
 0x926   :  { %v865_v46 = vpack.c.bf16 %v864_v44, %v864_v44 }
 0x928   :  { %3401 = vmatmul.mubr.msk.bf16.vlgmr.msra.gmra.mxu0 %vm180_vm2, %v865_v46 }
 0x929   :  { %3411 = vmatpush3.bf16.xpose.msra.mxu0 %v970_v48  ;;  %3412 = vmatprep.mubr.msk.bf16.mxu0 %vm3893_vm0, %v3892_v0 }
 0x92a   :  { %3422 = vmatprep.subr.bf16.mxu0 %v3892_v0 }
 0x930   :  { %3413 = vmatmul.mubr.msk.bf16.vlgmr.msra.gmra.mxu0 %vm180_vm2, %v963_v49 }
 0x931   :  { %3424 = vmatprep.mubr.msk.bf16.mxu0 %vm3893_vm0, %v3892_v0  ;;  %3423 = vmatpush3.bf16.msra.mxu0 %v919_v51 }
 0x932   :  { %3434 = vmatprep.subr.bf16.mxu0 %v3892_v0 }
 0x9e8   :  { %v908_v52 = vpop.f32.mrf.mxu0 }
 0x9e9   :  { %v914_v53 = vpack.c.bf16 %v908_v52, %v908_v52 }
 0x9ea   :  { %v3402_v54 = vpop.f32.mrf.mxu0 }
 0x9eb   :  { %3407 = vmatmul.mubr.msk.bf16.vlgmr.msra.gmra.mxu1 %vm180_vm2, %v914_v53 }
 0x9ec   :  { %v911_v55 = vpop.f32.mrf.mxu0  ;;  %3418 = vmatprep.mubr.msk.bf16.mxu1 %vm3893_vm0, %v3892_v0 }
 0x9ee   :  { %v3403_v56 = vpop.f32.mrf.mxu0 }
 0x9f0   :  { %v1006_v57 = vpop.f32.mrf.mxu0 }
 0x9f1   :  { %v1012_v58 = vmul.f32 0.35355338, %v1006_v57 }
 0x9f2   :  { %v3414_v59 = vpop.f32.mrf.mxu0 }
 0x9f3   :  { %v1013_v60 = vsel %vm180_vm2, %v1012_v58, -inf }
 0x9f4   :  { %1014 = vmax.xlane.f32.xlu1 %v1013_v60  ;;  %v1009_v61 = vpop.f32.mrf.mxu0 }
 0x9f6   :  { %v3415_v62 = vpop.f32.mrf.mxu0 }
 0xa05   :  { %1120 = vrot.lane.b32.xlu1 %v4022_v17, %s3901_s4 }
 0xa09   :  { %1118 = vrot.lane.b32.xlu1 %v4022_v17, %s3902_s25 }
 0xa7d   :  { %v1015_v63 = vpop.xlane.xlu1 %1014 }
 0xa7e   :  { %v1016_v1 = vsub.f32 %v1012_v58, %v1015_v63 }
 0xa80   :  { %v1017_v2 = vmul.f32 1.442695, %v1016_v1 }
 0xa81   :  { %v1121_v23 = vpop.permute.xlu1 %1120 }
 0xa82   :  { %3698 = vpow2.f32 %v1017_v2  ;;  %v1126_v26 = vsel %vm180_vm2, %v1121_v23, 0  ;;  %v1439_v23 = vsub.s32 1, %v4014_v7 }
 0xa8f   :  { %v3699_v5 = vpop.eup %3698 }
 0xa90   :  { %v1019_v6 = vsel %vm180_vm2, %v3699_v5, 0.0 }
 0xa91   :  { %1020 = vadd.xlane.f32.xlu0 %v1019_v6 }
 0xaa7   :  { %1025 = vrot.lane.b32.xlu0 %v4029_v18, %s3900_s24 }
 0xaab   :  { %v955_v10 = vpop.f32.mrf.mxu1 }
 0xaac   :  { %v4171_v11 = vadd.f32 %v955_v10, %v4104_v47  ;;  %v1119_v47 = vpop.permute.xlu1 %1118 }
 0xaad   :  { %v3408_v12 = vpop.f32.mrf.mxu1 }
 0xaaf   :  { %v958_v13 = vpop.f32.mrf.mxu1 }
 0xab1   :  { %v3409_v14 = vpop.f32.mrf.mxu1 }
 0xb1a   :  { %v1021_v15 = vpop.xlane.xlu0 %1020 }
 0xb1b   :  { %3700 = vrcp.f32 %v1021_v15 }
 0xb1e   :  { %v1026_v16 = vpop.permute.xlu0 %1025 }
 0xb1f   :  { %v1031_v19 = vsel %vm245_vm3, %v1026_v16, 0 }
 0xb20   :  { %3417 = vmatpush3.bf16.msra.mxu1 %v1031_v19 }
 0xb21   :  { %3428 = vmatprep.subr.bf16.mxu1 %v3892_v0 }
 0xb28   :  { %v3701_v21 = vpop.eup %3700 }
 0xb29   :  { %v1023_v22 = vmul.f32 %v3701_v21, %v3699_v5 }
 0xb2b   :  { %v1024_v24 = vpack.c.bf16 %v1023_v22, %v1023_v22 }
 0xb2d   :  { %3419 = vmatmul.mubr.msk.bf16.vlgmr.msra.gmra.mxu1 %vm180_vm2, %v1024_v24 }
 0xb2e   :  { %3429 = vmatpush3.bf16.xpose.msra.mxu1 %v1126_v26  ;;  %3430 = vmatprep.mubr.msk.bf16.mxu1 %vm3893_vm0, %v3892_v0 }
 0xb2f   :  { %3440 = vmatprep.subr.bf16.mxu1 %v3892_v0 }
 0xb35   :  { %3431 = vmatmul.mubr.msk.bf16.vlgmr.msra.gmra.mxu1 %vm180_vm2, %v1119_v47  ;;  %v1440_v47 = vrot.slane %v4017_v9, %v1439_v23 }
 0xb36   :  { %3442 = vmatprep.mubr.msk.bf16.mxu1 %vm3893_vm0, %v3892_v0 }
 0xbed   :  { %v1067_v27 = vpop.f32.mrf.mxu1 }
 0xbee   :  { %v1073_v28 = vpack.c.bf16 %v1067_v27, %v1067_v27 }
 0xbef   :  { %v3420_v29 = vpop.f32.mrf.mxu1 }
 0xbf0   :  { %3425 = vmatmul.mubr.msk.bf16.vlgmr.msra.gmra.mxu0 %vm180_vm2, %v1073_v28 }
 0xbf1   :  { %v1070_v30 = vpop.f32.mrf.mxu1  ;;  %3436 = vmatprep.mubr.msk.bf16.mxu0 %vm3893_vm0, %v3892_v0 }
 0xbf3   :  { %v3421_v31 = vpop.f32.mrf.mxu1 }
 0xbf5   :  { %v1162_v32 = vpop.f32.mrf.mxu1 }
 0xbf6   :  { %v1168_v33 = vmul.f32 0.35355338, %v1162_v32 }
 0xbf7   :  { %v3432_v34 = vpop.f32.mrf.mxu1 }
 0xbf8   :  { %v1169_v35 = vsel %vm180_vm2, %v1168_v33, -inf }
 0xbf9   :  { %1170 = vmax.xlane.f32.xlu0 %v1169_v35  ;;  %v1165_v36 = vpop.f32.mrf.mxu1 }
 0xbfb   :  { %v3433_v37 = vpop.f32.mrf.mxu1 }
 0xc0f   :  { %1181 = vrot.lane.b32.xlu0 %v4022_v17, %s3903_s26  ;;  %v798_v17 = vadd.f32 %v4131_v20, %v4136_v25  ;;  %v176_v25 = vld [vmem:[#allocation3 + $0xc] sm:$0xf] }
 0xc10   :  { %v1234_v57 = vsel %vm245_vm3, %v176_v25, 0 }
 0xc11   :  { %3441 = vmatpush3.bf16.msra.mxu1 %v1234_v57 }
 0xc12   :  { %3452 = vmatprep.subr.bf16.mxu1 %v3892_v0 }
 0xc13   :  { %1277 = vrot.lane.b32.xlu0 %v4029_v18, %s3902_s25 }
 0xc82   :  { %v1171_v38 = vpop.xlane.xlu0 %1170 }
 0xc83   :  { %v1172_v39 = vsub.f32 %v1168_v33, %v1171_v38 }
 0xc85   :  { %v1173_v40 = vmul.f32 1.442695, %v1172_v39 }
 0xc86   :  { %v1182_v41 = vpop.permute.xlu0 %1181 }
 0xc87   :  { %3702 = vpow2.f32 %v1173_v40  ;;  %v1187_v42 = vsel %vm245_vm3, %v1182_v41, 0 }
 0xc88   :  { %3435 = vmatpush3.bf16.msra.mxu0 %v1187_v42 }
 0xc89   :  { %3446 = vmatprep.subr.bf16.mxu0 %v3892_v0 }
 0xc8a   :  { %v1278_v20 = vpop.permute.xlu0 %1277 }
 0xc94   :  { %v3703_v43 = vpop.eup %3702 }
 0xc95   :  { %v1175_v44 = vsel %vm180_vm2, %v3703_v43, 0.0 }
 0xc96   :  { %1176 = vadd.xlane.f32.xlu1 %v1175_v44 }
 0xca7   :  { %1279 = vrot.lane.b32.xlu1 %v4029_v18, %s3901_s4 }
 0xcb0   :  { %v1111_v45 = vpop.f32.mrf.mxu0 }
 0xcb1   :  { %v4198_v46 = vadd.f32 %v1111_v45, %v798_v17 }
 0xcb2   :  { %v3426_v48 = vpop.f32.mrf.mxu0 }
 0xcb4   :  { %v1114_v49 = vpop.f32.mrf.mxu0 }
 0xcb6   :  { %v3427_v50 = vpop.f32.mrf.mxu0 }
 0xd1f   :  { %v1177_v51 = vpop.xlane.xlu1 %1176 }
 0xd20   :  { %3704 = vrcp.f32 %v1177_v51 }
 0xd23   :  { %v1280_v54 = vpop.permute.xlu1 %1279 }
 0xd24   :  { %v1285_v56 = vsel %vm180_vm2, %v1280_v54, 0  ;;  %v3669_v54 = vld [vmem:[#allocation6] sm:$0xff]  }
 0xd2d   :  { %v3705_v52 = vpop.eup %3704 }
 0xd2e   :  { %v1179_v53 = vmul.f32 %v3705_v52, %v3703_v43 }
 0xd30   :  { %v1180_v55 = vpack.c.bf16 %v1179_v53, %v1179_v53 }
 0xd32   :  { %3437 = vmatmul.mubr.msk.bf16.vlgmr.msra.gmra.mxu0 %vm180_vm2, %v1180_v55 }
 0xd33   :  { %3447 = vmatpush3.bf16.xpose.msra.mxu0 %v1285_v56  ;;  %3448 = vmatprep.mubr.msk.bf16.mxu0 %vm3893_vm0, %v3892_v0 }
 0xd34   :  { %3458 = vmatprep.subr.bf16.mxu0 %v3892_v0 }
 0xd3a   :  { %3449 = vmatmul.mubr.msk.bf16.vlgmr.msra.gmra.mxu0 %vm180_vm2, %v1278_v20 }
 0xd3b   :  { %3460 = vmatprep.mubr.msk.bf16.mxu0 %vm3893_vm0, %v3892_v0  ;;  %3459 = vmatpush3.bf16.msra.mxu0 %v1234_v57  ;;  %v3670_v57 = vld [vmem:[%s4525_s1] sm:$0xff]  }
 0xdf2   :  { %v1223_v58 = vpop.f32.mrf.mxu0 }
 0xdf3   :  { %v1229_v59 = vpack.c.bf16 %v1223_v58, %v1223_v58  ;;  %v1491_v58 = vsub.s32 4, %v4014_v7 }
 0xdf4   :  { %v3438_v60 = vpop.f32.mrf.mxu0 }
 0xdf5   :  { %3443 = vmatmul.mubr.msk.bf16.vlgmr.msra.gmra.mxu1 %vm180_vm2, %v1229_v59  ;;  %v1492_v59 = vrot.slane %v4017_v9, %v1491_v58 }
 0xdf6   :  { %v1226_v61 = vpop.f32.mrf.mxu0  ;;  %3454 = vmatprep.mubr.msk.bf16.mxu1 %vm3893_vm0, %v3892_v0 }
 0xdf8   :  { %v3439_v62 = vpop.f32.mrf.mxu0 }
 0xdfa   :  { %v1321_v63 = vpop.f32.mrf.mxu0 }
 0xdfb   :  { %v1327_v1 = vmul.f32 0.35355338, %v1321_v63 }
 0xdfc   :  { %v3450_v2 = vpop.f32.mrf.mxu0 }
 0xdfd   :  { %v1328_v5 = vsel %vm180_vm2, %v1327_v1, -inf }
 0xdfe   :  { %1329 = vmax.xlane.f32.xlu1 %v1328_v5  ;;  %v1324_v6 = vpop.f32.mrf.mxu0 }
 0xe00   :  { %v3451_v10 = vpop.f32.mrf.mxu0 }
 0xe01   :  { %v3671_v10 = vld [vmem:[%s4525_s1 + $0x8] sm:$0xff]  }
 0xe87   :  { %v1330_v12 = vpop.xlane.xlu1 %1329 }
 0xe88   :  { %v1331_v13 = vsub.f32 %v1327_v1, %v1330_v12  ;;  %v1474_v12 = vsub.s32 2, %v4014_v7 }
 0xe8a   :  { %v1332_v14 = vmul.f32 1.442695, %v1331_v13 }
 0xe8c   :  { %3706 = vpow2.f32 %v1332_v14 }
 0xe99   :  { %v3707_v15 = vpop.eup %3706 }
 0xe9a   :  { %v1334_v16 = vsel %vm180_vm2, %v3707_v15, 0.0 }
 0xe9b   :  { %1335 = vadd.xlane.f32.xlu0 %v1334_v16  ;;  %v1480_v16 = vsub.s32 3, %v4014_v7 }
 0xeb1   :  { %1340 = vrot.lane.b32.xlu0 %v4029_v18, %s3903_s26 }
 0xeb5   :  { %v1270_v19 = vpop.f32.mrf.mxu1  ;;  %1564 = vrot.lane.b32.xlu0 %v3669_v54, %s3895_s2 }
 0xeb6   :  { %v1276_v21 = vadd.f32 %v1270_v19, %v4171_v11 }
 0xeb7   :  { %v3444_v22 = vpop.f32.mrf.mxu1 }
 0xeb8   :  { %1433 = vst.msk [vmem:[#allocation2] sm:$0xff] %vm127_vm1, %v1276_v21 }
 0xeb9   :  { %v1273_v24 = vpop.f32.mrf.mxu1  ;;  %1571 = vrot.lane.b32.xlu0 %v1492_v59, %s3895_s2 }
 0xeba   :  { %v1481_v24 = vrot.slane %v4017_v9, %v1480_v16 }
 0xebb   :  { %v3445_v26 = vpop.f32.mrf.mxu1 }
 0xebf   :  { %v1435_v27 = vld [vmem:[#allocation2] sm:$0xff] }
 0xec0   :  { %v1441_v28 = vadd.f32 %v1440_v47, %v1435_v27 }
 0xec2   :  { %v1443_v29 = vadd.f32 %v1441_v28, %v4000_v3 }
 0xec4   :  { %v1445_v18 = vsel %vm127_vm1, %v1443_v29, 0.0 }
 0xec5   :  { %1446 = vadd.xlane.f32.xlu1 %v1445_v18 }
 0xf24   :  { %v1336_v30 = vpop.xlane.xlu0 %1335 }
 0xf25   :  { %3708 = vrcp.f32 %v1336_v30 }
 0xf28   :  { %v1341_v11 = vpop.permute.xlu0 %1340 }
 0xf29   :  { %v1346_v31 = vsel %vm245_vm3, %v1341_v11, 0 }
 0xf2a   :  { %3453 = vmatpush3.bf16.msra.mxu1 %v1346_v31 }
 0xf2b   :  { %3464 = vmatprep.subr.bf16.mxu1 %v3892_v0 }
 0xf2c   :  { %v1565_v6 = vpop.permute.xlu0 %1564 }
 0xf30   :  { %v1572_v11 = vpop.permute.xlu0 %1571 }
 0xf32   :  { %v3709_v32 = vpop.eup %3708 }
 0xf33   :  { %v1338_v33 = vmul.f32 %v3709_v32, %v3707_v15  ;;  %v1475_v15 = vrot.slane %v4017_v9, %v1474_v12 }
 0xf35   :  { %v1339_v34 = vpack.c.bf16 %v1338_v33, %v1338_v33 }
 0xf37   :  { %3455 = vmatmul.mubr.msk.bf16.vlgmr.msra.gmra.mxu1 %vm180_vm2, %v1339_v34 }
 0xf38   :  { %3468 = vmatprep.mubr.msk.bf16.mxu1 %vm3893_vm0, %v3892_v0 }
 0xf4e   :  { %v1447_v42 = vpop.xlane.xlu1 %1446 }
 0xf4f   :  { %v1452_v17 = vmul.f32 0.03125, %v1447_v42 }
 0xf51   :  { %v1454_v48 = vsub.f32 %v1443_v29, %v1452_v17 }
 0xf53   :  { %v1456_v52 = vmul.f32 %v1454_v48, %v1454_v48 }
 0xf55   :  { %v1458_v53 = vsel %vm127_vm1, %v1456_v52, 0.0 }
 0xff7   :  { %v1382_v3 = vpop.f32.mrf.mxu1 }
 0xff8   :  { %v1388_v35 = vpack.c.bf16 %v1382_v3, %v1382_v3 }
 0xff9   :  { %v3456_v36 = vpop.f32.mrf.mxu1 }
 0xffa   :  { %3461 = vmatmul.mubr.msk.bf16.vlgmr.msra.gmra.mxu0 %vm180_vm2, %v1388_v35 }
 0xffb   :  { %v1385_v37 = vpop.f32.mrf.mxu1  ;;  %3476 = vmatprep.mubr.msk.bf16.mxu0 %vm127_vm1, %v3670_v57 }
 0xffd   :  { %v3457_v38 = vpop.f32.mrf.mxu1 }
0x10ba   :  { %v1426_v39 = vpop.f32.mrf.mxu0 }
0x10bb   :  { %v1432_v40 = vadd.f32 %v1426_v39, %v4198_v46  ;;  %v3668_v46 = vld [vmem:[#allocation6 + $0x8] sm:$0xff]  }
0x10bc   :  { %v3462_v41 = vpop.f32.mrf.mxu0  ;;  %3465 = vmatpush3.bf16.msra.mxu1 %v3668_v46 }
0x10bd   :  { %1434 = vst.msk [vmem:[#allocation2 + $0x8] sm:$0xff] %vm127_vm1, %v1432_v40  ;;  %3466 = vmatprep.subr.bf16.mxu1 %v3892_v0 }
0x10be   :  { %v1429_v43 = vpop.f32.mrf.mxu0 }
0x10c0   :  { %v3463_v44 = vpop.f32.mrf.mxu0  ;;  %3467 = vmatpush3.bf16.msra.mxu1 %v3669_v54 }
0x10c1   :  { %3480 = vmatprep.subr.bf16.mxu1 %v3892_v0 }
0x10c4   :  { %v1436_v45 = vld [vmem:[#allocation2 + $0x8] sm:$0xff] }
0x10c5   :  { %v1442_v49 = vadd.f32 %v1440_v47, %v1436_v45 }
0x10c7   :  { %v1444_v50 = vadd.f32 %v1442_v49, %v4005_v4 }
0x10c9   :  { %v1448_v51 = vsel %vm127_vm1, %v1444_v50, 0.0 }
0x10ca   :  { %1449 = vadd.xlane.f32.xlu1 %v1448_v51 }
0x10ce   :  { %1459 = vadd.xlane.f32.xlu1 %v1458_v53 }
0x1153   :  { %v1450_v55 = vpop.xlane.xlu1 %1449 }
0x1154   :  { %v1453_v56 = vmul.f32 0.03125, %v1450_v55 }
0x1156   :  { %v1455_v4 = vsub.f32 %v1444_v50, %v1453_v56 }
0x1157   :  { %v1460_v60 = vpop.xlane.xlu1 %1459 }
0x1158   :  { %v1457_v20 = vmul.f32 %v1455_v4, %v1455_v4  ;;  %v1464_v61 = vmul.f32 0.03125, %v1460_v60 }
0x115a   :  { %v1461_v25 = vsel %vm127_vm1, %v1457_v20, 0.0  ;;  %v1466_v62 = vadd.f32 1e-05, %v1464_v61 }
0x115b   :  { %1462 = vadd.xlane.f32.xlu1 %v1461_v25 }
0x115c   :  { %3710 = vrsqrt.f32 %v1466_v62 }
0x1169   :  { %v3711_v13 = vpop.eup %3710 }
0x116a   :  { %v1470_v14 = vmul.f32 %v3711_v13, %v1454_v48 }
0x116c   :  { %1566 = vrot.lane.b32.xlu1 %v3668_v46, %s3895_s2  ;;  %v1476_v22 = vmul.f32 %v1475_v15, %v1470_v14 }
0x116e   :  { %v4263_v47 = vadd.f32 %v1481_v24, %v1476_v22 }
0x11e4   :  { %v1463_v63 = vpop.xlane.xlu1 %1462 }
0x11e5   :  { %v1465_v1 = vmul.f32 0.03125, %v1463_v63 }
0x11e7   :  { %v1467_v2 = vadd.f32 1e-05, %v1465_v1 }
0x11e8   :  { %v1567_v5 = vpop.permute.xlu1 %1566 }
0x11e9   :  { %3712 = vrsqrt.f32 %v1467_v2  ;;  %3472 = vmatprep.subr.bf16.mxu0 %v1567_v5 }
0x11ea   :  { %3473 = vmatpush3.bf16.msra.mxu0 %v1567_v5 }
0x11eb   :  { %3474 = vmatprep.subr.bf16.mxu0 %v1565_v6 }
0x11ee   :  { %3475 = vmatpush3.bf16.msra.mxu0 %v1565_v6 }
0x11ef   :  { %3486 = vmatprep.subr.bf16.mxu0 %v3892_v0 }
0x11f1   :  { %3477 = vmatmul.mubr.msk.bf16.vlgmr.msra.gmra.mxu0 %vm127_vm1, %v3671_v10 }
0x11f2   :  { %3488 = vmatprep.mubr.msk.bf16.mxu0 %vm3893_vm0, %v3892_v0 }
0x11f6   :  { %v3713_v19 = vpop.eup %3712 }
0x11f7   :  { %v1471_v21 = vmul.f32 %v3713_v19, %v1455_v4 }
0x11f9   :  { %v1477_v26 = vmul.f32 %v1475_v15, %v1471_v21 }
0x11fb   :  { %v4265_v27 = vadd.f32 %v1481_v24, %v1477_v26 }
0x11fd   :  { %v1488_v28 = vpack.c.bf16 %v4265_v27, %v4263_v47 }
0x11ff   :  { %3469 = vmatmul.mubr.msk.bf16.vlgmr.msra.gmra.mxu1 %vm127_vm1, %v1488_v28 }
0x1200   :  { %3482 = vmatprep.mubr.msk.bf16.mxu1 %vm3893_vm0, %v3892_v0 }
0x12b1   :  { %v3478_v29 = vpop.f32.mrf.mxu0 }
0x12b2   :  { %v1623_v35 = vadd.f32 %v3478_v29, %v1572_v11 }
0x12b3   :  { %v1614_v18 = vpop.f32.mrf.mxu0 }
0x12b4   :  { %v1615_v32 = vadd.f32 %v1614_v18, %v1572_v11 }
0x12b5   :  { %v3479_v30 = vpop.f32.mrf.mxu0 }
0x12b6   :  { %v1626_v36 = vadd.f32 %v3479_v30, %v1572_v11 }
0x12b7   :  { %v1617_v31 = vpop.f32.mrf.mxu0 }
0x12b8   :  { %v1618_v9 = vadd.f32 %v1617_v31, %v1572_v11  ;;  %v4279_v39 = vpack.c.bf16 %v1626_v36, %v1623_v35 }
0x12ba   :  { %v4272_v33 = vpack.c.bf16 %v1618_v9, %v1615_v32  ;;  %v1749_v44 = vsel %vm180_vm2, %v4279_v39, 0 }
0x12bc   :  { %1854 = vrot.lane.b32.xlu0 %v4272_v33, %s3896_s21  ;;  %v1639_v34 = vsel %vm180_vm2, %v4272_v33, 0 }
0x12bd   :  { %3481 = vmatpush3.bf16.xpose.msra.mxu1 %v1639_v34 }
0x12be   :  { %3492 = vmatprep.subr.bf16.mxu1 %v3892_v0 }
0x12bf   :  { %v1542_v3 = vpop.f32.mrf.mxu1 }
0x12c0   :  { %v1543_v40 = vadd.f32 %v1542_v3, %v1492_v59 }
0x12c1   :  { %v3470_v37 = vpop.f32.mrf.mxu1 }
0x12c2   :  { %v1632_v37 = vld [vmem:[#allocation8 + $0x4] sm:$0xf] }
0x12c3   :  { %v1545_v38 = vpop.f32.mrf.mxu1 }
0x12c4   :  { %v1546_v41 = vadd.f32 %v1545_v38, %v1492_v59  ;;  %v1966_v38 = vsel %vm245_vm3, %v1632_v37, 0 }
0x12c5   :  { %v3471_v42 = vpop.f32.mrf.mxu1 }
0x12c6   :  { %v4281_v43 = vpack.c.bf16 %v1546_v41, %v1543_v40 }
0x12c8   :  { %1852 = vrot.lane.b32.xlu0 %v4281_v43, %s3896_s21  ;;  %3483 = vmatmul.mubr.msk.bf16.vlgmr.msra.gmra.mxu1 %vm180_vm2, %v4281_v43  ;;  %v4293_v17 = vrot.slane %v4281_v43, 4 }
0x12c9   :  { %3493 = vmatpush3.bf16.xpose.msra.mxu1 %v1749_v44  ;;  %3494 = vmatprep.mubr.msk.bf16.mxu1 %vm3893_vm0, %v3892_v0  ;;  %v1631_v44 = vld [vmem:[#allocation8] sm:$0xf] }
0x12ca   :  { %3504 = vmatprep.subr.bf16.mxu1 %v3892_v0 }
0x12d0   :  { %3495 = vmatmul.mubr.msk.bf16.vlgmr.msra.gmra.mxu1 %vm180_vm2, %v4293_v17 }
0x12d1   :  { %3506 = vmatprep.mubr.msk.bf16.mxu1 %vm3893_vm0, %v3892_v0 }
0x132e   :  { %v1855_v45 = vpop.permute.xlu0 %1854 }
0x132f   :  { %v1860_v48 = vsel %vm180_vm2, %v1855_v45, 0 }
0x1330   :  { %3505 = vmatpush3.bf16.xpose.msra.mxu1 %v1860_v48 }
0x1331   :  { %3516 = vmatprep.subr.bf16.mxu1 %v3892_v0 }
0x133a   :  { %v1853_v49 = vpop.permute.xlu0 %1852 }
0x133b   :  { %3507 = vmatmul.mubr.msk.bf16.vlgmr.msra.gmra.mxu1 %vm180_vm2, %v1853_v49  ;;  %v4332_v49 = vsel %vm245_vm3, %v1631_v44, 0 }
0x133c   :  { %3518 = vmatprep.mubr.msk.bf16.mxu1 %vm3893_vm0, %v3892_v0  ;;  %3517 = vmatpush3.bf16.msra.mxu1 %v1966_v38 }
0x133d   :  { %3528 = vmatprep.subr.bf16.mxu1 %v3892_v0 }
0x1388   :  { %v1675_v50 = vpop.f32.mrf.mxu1 }
0x1389   :  { %v1681_v51 = vmul.f32 0.35355338, %v1675_v50 }
0x138a   :  { %v3484_v52 = vpop.f32.mrf.mxu1 }
0x138b   :  { %v1683_v53 = vsel %vm1682_vm4, %v1681_v51, -inf }
0x138c   :  { %1684 = vmax.xlane.f32.xlu1 %v1683_v53  ;;  %v1678_v46 = vpop.f32.mrf.mxu1 }
0x138e   :  { %v3485_v54 = vpop.f32.mrf.mxu1 }
0x1390   :  { %v1785_v55 = vpop.f32.mrf.mxu1 }
0x1391   :  { %v1791_v56 = vmul.f32 0.35355338, %v1785_v55 }
0x1392   :  { %v3496_v4 = vpop.f32.mrf.mxu1 }
0x1393   :  { %v1792_v20 = vsel %vm1682_vm4, %v1791_v56, -inf }
0x1394   :  { %1793 = vmax.xlane.f32.xlu0 %v1792_v20  ;;  %v1788_v25 = vpop.f32.mrf.mxu1 }
0x1396   :  { %v3497_v57 = vpop.f32.mrf.mxu1 }
0x13fb   :  { %v1896_v58 = vpop.f32.mrf.mxu1 }
0x13fc   :  { %v1902_v59 = vmul.f32 0.35355338, %v1896_v58 }
0x13fd   :  { %v3508_v60 = vpop.f32.mrf.mxu1 }
0x13fe   :  { %v1903_v61 = vsel %vm1682_vm4, %v1902_v59, -inf }
0x13ff   :  { %1904 = vmax.xlane.f32.xlu0 %v1903_v61  ;;  %v1899_v62 = vpop.f32.mrf.mxu1 }
0x1401   :  { %v3509_v63 = vpop.f32.mrf.mxu1 }
0x1415   :  { %v1685_v1 = vpop.xlane.xlu1 %1684 }
0x1416   :  { %v1686_v2 = vsub.f32 %v1681_v51, %v1685_v1 }
0x1418   :  { %v1687_v5 = vmul.f32 1.442695, %v1686_v2 }
0x141a   :  { %3714 = vpow2.f32 %v1687_v5 }
0x141d   :  { %v1794_v6 = vpop.xlane.xlu0 %1793 }
0x141e   :  { %v1795_v10 = vsub.f32 %v1791_v56, %v1794_v6 }
0x1420   :  { %v1796_v13 = vmul.f32 1.442695, %v1795_v10 }
0x1422   :  { %3716 = vpow2.f32 %v1796_v13 }
0x1427   :  { %v3715_v14 = vpop.eup %3714 }
0x1428   :  { %v1689_v15 = vsel %vm1682_vm4, %v3715_v14, 0.0 }
0x1429   :  { %1690 = vadd.xlane.f32.xlu1 %v1689_v15 }
0x142f   :  { %v3717_v19 = vpop.eup %3716 }
0x1430   :  { %v1798_v21 = vsel %vm1682_vm4, %v3717_v19, 0.0 }
0x1431   :  { %1799 = vadd.xlane.f32.xlu0 %v1798_v21 }
0x143a   :  { %1805 = vrot.lane.b32.xlu1 %v4279_v39, %s3895_s2 }
0x1447   :  { %1696 = vrot.lane.b32.xlu0 %v4272_v33, %s3895_s2 }
0x144b   :  { %2056 = vrot.lane.b32.xlu0 %v4279_v39, %s3896_s21 }
0x1488   :  { %v1905_v22 = vpop.xlane.xlu0 %1904 }
0x1489   :  { %v1906_v24 = vsub.f32 %v1902_v59, %v1905_v22 }
0x148b   :  { %v1907_v26 = vmul.f32 1.442695, %v1906_v24 }
0x148d   :  { %3718 = vpow2.f32 %v1907_v26 }
0x149a   :  { %v3719_v28 = vpop.eup %3718 }
0x149b   :  { %v1909_v29 = vsel %vm1682_vm4, %v3719_v28, 0.0 }
0x149c   :  { %1910 = vadd.xlane.f32.xlu1 %v1909_v29 }
0x14ad   :  { %1915 = vrot.lane.b32.xlu1 %v4272_v33, %s3894_s0 }
0x14b1   :  { %2054 = vrot.lane.b32.xlu1 %v4293_v17, %s3896_s21 }
0x14b2   :  { %v1691_v18 = vpop.xlane.xlu1 %1690 }
0x14b3   :  { %3720 = vrcp.f32 %v1691_v18 }
0x14b6   :  { %v1806_v34 = vpop.permute.xlu1 %1805 }
0x14ba   :  { %v1800_v30 = vpop.xlane.xlu0 %1799 }
0x14bb   :  { %3722 = vrcp.f32 %v1800_v30 }
0x14be   :  { %v1697_v11 = vpop.permute.xlu0 %1696 }
0x14bf   :  { %3487 = vmatpush3.bf16.msra.mxu0 %v1697_v11 }
0x14c0   :  { %v3721_v31 = vpop.eup %3720  ;;  %3498 = vmatprep.subr.bf16.mxu0 %v3892_v0 }
0x14c1   :  { %v1693_v32 = vmul.f32 %v3721_v31, %v3715_v14 }
0x14c2   :  { %v2057_v20 = vpop.permute.xlu0 %2056 }
0x14c3   :  { %v1694_v9 = vpack.c.bf16 %v1693_v32, %v1693_v32  ;;  %v2062_v59 = vsel %vm180_vm2, %v2057_v20, 0 }
0x14c5   :  { %3489 = vmatmul.mubr.msk.bf16.vlgmr.msra.gmra.mxu0 %vm1682_vm4, %v1694_v9 }
0x14c6   :  { %3499 = vmatpush3.bf16.msra.mxu0 %v1806_v34  ;;  %3500 = vmatprep.mubr.msk.bf16.mxu0 %vm3893_vm0, %v3892_v0 }
0x14c7   :  { %3510 = vmatprep.subr.bf16.mxu0 %v3892_v0 }
0x14c8   :  { %v3723_v3 = vpop.eup %3722 }
0x14c9   :  { %v1802_v35 = vmul.f32 %v3723_v3, %v3717_v19 }
0x14cb   :  { %v1803_v36 = vpack.c.bf16 %v1802_v35, %v1802_v35 }
0x14cd   :  { %3501 = vmatmul.mubr.msk.bf16.vlgmr.msra.gmra.mxu0 %vm1682_vm4, %v1803_v36 }
0x14ce   :  { %3512 = vmatprep.mubr.msk.bf16.mxu0 %vm3893_vm0, %v3892_v0 }
0x1525   :  { %v1911_v40 = vpop.xlane.xlu1 %1910 }
0x1526   :  { %3724 = vrcp.f32 %v1911_v40 }
0x1529   :  { %v1916_v41 = vpop.permute.xlu1 %1915 }
0x152a   :  { %3511 = vmatpush3.bf16.msra.mxu0 %v1916_v41 }
0x152b   :  { %3522 = vmatprep.subr.bf16.mxu0 %v3892_v0 }
0x152d   :  { %v2055_v62 = vpop.permute.xlu1 %2054 }
0x1533   :  { %v3725_v42 = vpop.eup %3724 }
0x1534   :  { %v1913_v45 = vmul.f32 %v3725_v42, %v3719_v28 }
0x1536   :  { %v1914_v48 = vpack.c.bf16 %v1913_v45, %v1913_v45 }
0x1538   :  { %3513 = vmatmul.mubr.msk.bf16.vlgmr.msra.gmra.mxu0 %vm1682_vm4, %v1914_v48 }
0x1539   :  { %3523 = vmatpush3.bf16.msra.mxu0 %v4332_v49  ;;  %3524 = vmatprep.mubr.msk.bf16.mxu0 %vm3893_vm0, %v3892_v0 }
0x153a   :  { %3534 = vmatprep.subr.bf16.mxu0 %v3892_v0 }
0x1585   :  { %v1736_v50 = vpop.f32.mrf.mxu0 }
0x1586   :  { %v1742_v51 = vpack.c.bf16 %v1736_v50, %v1736_v50 }
0x1587   :  { %v3490_v52 = vpop.f32.mrf.mxu0 }
0x1588   :  { %3525 = vmatmul.mubr.msk.bf16.vlgmr.msra.gmra.mxu0 %vm180_vm2, %v1742_v51 }
0x1589   :  { %v1739_v53 = vpop.f32.mrf.mxu0  ;;  %3536 = vmatprep.mubr.msk.bf16.mxu0 %vm3893_vm0, %v3892_v0 }
0x158b   :  { %v3491_v46 = vpop.f32.mrf.mxu0 }
0x158d   :  { %v1845_v54 = vpop.f32.mrf.mxu0 }
0x158e   :  { %v1851_v35 = vpack.c.bf16 %v1845_v54, %v1845_v54 }
0x158f   :  { %v3502_v55 = vpop.f32.mrf.mxu0 }
0x1591   :  { %v1848_v56 = vpop.f32.mrf.mxu0 }
0x1593   :  { %v3503_v4 = vpop.f32.mrf.mxu0 }
0x15f8   :  { %v1955_v25 = vpop.f32.mrf.mxu0 }
0x15f9   :  { %v1961_v57 = vpack.c.bf16 %v1955_v25, %v1955_v25 }
0x15fa   :  { %v3514_v58 = vpop.f32.mrf.mxu0 }
0x15fb   :  { %3519 = vmatmul.mubr.msk.bf16.vlgmr.msra.gmra.mxu1 %vm180_vm2, %v1961_v57 }
0x15fc   :  { %3529 = vmatpush3.bf16.xpose.msra.mxu1 %v2062_v59  ;;  %v1958_v60 = vpop.f32.mrf.mxu0  ;;  %3530 = vmatprep.mubr.msk.bf16.mxu1 %vm3893_vm0, %v3892_v0 }
0x15fd   :  { %3540 = vmatprep.subr.bf16.mxu1 %v3892_v0 }
0x15fe   :  { %v3515_v61 = vpop.f32.mrf.mxu0 }
0x1603   :  { %3531 = vmatmul.mubr.msk.bf16.vlgmr.msra.gmra.mxu1 %vm180_vm2, %v2055_v62 }
0x1604   :  { %3541 = vmatpush3.bf16.msra.mxu1 %v1966_v38  ;;  %3542 = vmatprep.mubr.msk.bf16.mxu1 %vm3893_vm0, %v3892_v0 }
0x1605   :  { %3552 = vmatprep.subr.bf16.mxu1 %v3892_v0 }
0x1648   :  { %v4351_v63 = vpop.f32.mrf.mxu0 }
0x164a   :  { %v3526_v1 = vpop.f32.mrf.mxu0 }
0x164c   :  { %v2051_v2 = vpop.f32.mrf.mxu0 }
0x164e   :  { %v3527_v5 = vpop.f32.mrf.mxu0 }
0x16bb   :  { %v4353_v6 = vpop.f32.mrf.mxu1 }
0x16bd   :  { %v3520_v10 = vpop.f32.mrf.mxu1 }
0x16bf   :  { %v2005_v13 = vpop.f32.mrf.mxu1 }
0x16c1   :  { %v3521_v14 = vpop.f32.mrf.mxu1 }
0x16c3   :  { %v2098_v15 = vpop.f32.mrf.mxu1 }
0x16c4   :  { %v2104_v19 = vmul.f32 0.35355338, %v2098_v15 }
0x16c5   :  { %v3532_v21 = vpop.f32.mrf.mxu1 }
0x16c6   :  { %v2105_v22 = vsel %vm1682_vm4, %v2104_v19, -inf  ;;  %v1633_v21 = vld [vmem:[#allocation8 + $0x8] sm:$0xf] }
0x16c7   :  { %2106 = vmax.xlane.f32.xlu0 %v2105_v22  ;;  %v2101_v24 = vpop.f32.mrf.mxu1  ;;  %v2364_v22 = vsel %vm245_vm3, %v1633_v21, 0 }
0x16c9   :  { %v3533_v26 = vpop.f32.mrf.mxu1 }
0x16dd   :  { %2117 = vrot.lane.b32.xlu0 %v4279_v39, %s3894_s0 }
0x16e1   :  { %2250 = vrot.lane.b32.xlu0 %v4281_v43, %s3899_s23 }
0x1750   :  { %v2107_v28 = vpop.xlane.xlu0 %2106 }
0x1751   :  { %v2108_v29 = vsub.f32 %v2104_v19, %v2107_v28 }
0x1753   :  { %v2109_v18 = vmul.f32 1.442695, %v2108_v29 }
0x1754   :  { %v2118_v30 = vpop.permute.xlu0 %2117 }
0x1755   :  { %3726 = vpow2.f32 %v2109_v18  ;;  %3535 = vmatpush3.bf16.msra.mxu0 %v2118_v30 }
0x1756   :  { %3546 = vmatprep.subr.bf16.mxu0 %v3892_v0 }
0x1758   :  { %v2251_v48 = vpop.permute.xlu0 %2250 }
0x1762   :  { %v3727_v11 = vpop.eup %3726 }
0x1763   :  { %v2111_v31 = vsel %vm1682_vm4, %v3727_v11, 0.0 }
0x1764   :  { %2112 = vadd.xlane.f32.xlu1 %v2111_v31 }
0x1775   :  { %2252 = vrot.lane.b32.xlu1 %v4272_v33, %s3899_s23 }
0x17ed   :  { %v2113_v32 = vpop.xlane.xlu1 %2112 }
0x17ee   :  { %3728 = vrcp.f32 %v2113_v32 }
0x17f1   :  { %v2253_v36 = vpop.permute.xlu1 %2252 }
0x17f2   :  { %v2258_v41 = vsel %vm180_vm2, %v2253_v36, 0 }
0x17fb   :  { %v3729_v9 = vpop.eup %3728 }
0x17fc   :  { %v2115_v34 = vmul.f32 %v3729_v9, %v3727_v11 }
0x17fe   :  { %v2116_v3 = vpack.c.bf16 %v2115_v34, %v2115_v34 }
0x1800   :  { %3537 = vmatmul.mubr.msk.bf16.vlgmr.msra.gmra.mxu0 %vm1682_vm4, %v2116_v3 }
0x1801   :  { %3547 = vmatpush3.bf16.msra.mxu0 %v4332_v49  ;;  %3548 = vmatprep.mubr.msk.bf16.mxu0 %vm3893_vm0, %v3892_v0 }
0x1802   :  { %3558 = vmatprep.subr.bf16.mxu0 %v3892_v0 }
0x1808   :  { %3549 = vmatmul.mubr.msk.bf16.vlgmr.msra.gmra.mxu0 %vm180_vm2, %v1851_v35 }
0x1809   :  { %3560 = vmatprep.mubr.msk.bf16.mxu0 %vm3893_vm0, %v3892_v0 }
0x18c0   :  { %v2157_v37 = vpop.f32.mrf.mxu0 }
0x18c1   :  { %v2163_v38 = vpack.c.bf16 %v2157_v37, %v2157_v37 }
0x18c2   :  { %v3538_v40 = vpop.f32.mrf.mxu0 }
0x18c3   :  { %3543 = vmatmul.mubr.msk.bf16.vlgmr.msra.gmra.mxu1 %vm180_vm2, %v2163_v38 }
0x18c4   :  { %3553 = vmatpush3.bf16.xpose.msra.mxu1 %v2258_v41  ;;  %v2160_v42 = vpop.f32.mrf.mxu0  ;;  %3554 = vmatprep.mubr.msk.bf16.mxu1 %vm3893_vm0, %v3892_v0  ;;  %v2049_v41 = vadd.f32 %v4351_v63, %v4353_v6 }
0x18c5   :  { %3564 = vmatprep.subr.bf16.mxu1 %v3892_v0 }
0x18c6   :  { %v3539_v44 = vpop.f32.mrf.mxu0 }
0x18c8   :  { %v4377_v45 = vpop.f32.mrf.mxu0 }
0x18ca   :  { %v3550_v49 = vpop.f32.mrf.mxu0 }
0x18cb   :  { %3555 = vmatmul.mubr.msk.bf16.vlgmr.msra.gmra.mxu1 %vm180_vm2, %v2251_v48 }
0x18cc   :  { %v2247_v50 = vpop.f32.mrf.mxu0  ;;  %3566 = vmatprep.mubr.msk.bf16.mxu1 %vm3893_vm0, %v3892_v0  ;;  %3565 = vmatpush3.bf16.msra.mxu1 %v2364_v22 }
0x18cd   :  { %3576 = vmatprep.subr.bf16.mxu1 %v3892_v0 }
0x18ce   :  { %v3551_v51 = vpop.f32.mrf.mxu0 }
0x1983   :  { %v4382_v52 = vpop.f32.mrf.mxu1 }
0x1985   :  { %v3544_v53 = vpop.f32.mrf.mxu1 }
0x1987   :  { %v2204_v46 = vpop.f32.mrf.mxu1 }
0x1989   :  { %v3545_v54 = vpop.f32.mrf.mxu1 }
0x198b   :  { %v2294_v55 = vpop.f32.mrf.mxu1 }
0x198c   :  { %v2300_v56 = vmul.f32 0.35355338, %v2294_v55 }
0x198d   :  { %v3556_v4 = vpop.f32.mrf.mxu1 }
0x198e   :  { %v2301_v20 = vsel %vm1682_vm4, %v2300_v56, -inf }
0x198f   :  { %2302 = vmax.xlane.f32.xlu1 %v2301_v20  ;;  %v2297_v25 = vpop.f32.mrf.mxu1 }
0x1991   :  { %v3557_v57 = vpop.f32.mrf.mxu1 }
0x19a0   :  { %2409 = vrot.lane.b32.xlu1 %v4279_v39, %s3899_s23 }
0x19a4   :  { %2407 = vrot.lane.b32.xlu1 %v4293_v17, %s3899_s23 }
0x1a18   :  { %v2303_v58 = vpop.xlane.xlu1 %2302 }
0x1a19   :  { %v2304_v59 = vsub.f32 %v2300_v56, %v2303_v58 }
0x1a1b   :  { %v2305_v60 = vmul.f32 1.442695, %v2304_v59 }
0x1a1c   :  { %v2410_v13 = vpop.permute.xlu1 %2409 }
0x1a1d   :  { %3730 = vpow2.f32 %v2305_v60  ;;  %v2415_v15 = vsel %vm180_vm2, %v2410_v13, 0 }
0x1a20   :  { %v2408_v19 = vpop.permute.xlu1 %2407 }
0x1a2a   :  { %v3731_v61 = vpop.eup %3730 }
0x1a2b   :  { %v2307_v62 = vsel %vm1682_vm4, %v3731_v61, 0.0 }
0x1a2c   :  { %2308 = vadd.xlane.f32.xlu0 %v2307_v62 }
0x1a42   :  { %2313 = vrot.lane.b32.xlu0 %v4272_v33, %s3898_s14 }
0x1ab5   :  { %v2309_v1 = vpop.xlane.xlu0 %2308 }
0x1ab6   :  { %3732 = vrcp.f32 %v2309_v1 }
0x1ab9   :  { %v2314_v2 = vpop.permute.xlu0 %2313 }
0x1aba   :  { %3559 = vmatpush3.bf16.msra.mxu0 %v2314_v2 }
0x1abb   :  { %3570 = vmatprep.subr.bf16.mxu0 %v3892_v0 }
0x1ac3   :  { %v3733_v5 = vpop.eup %3732 }
0x1ac4   :  { %v2311_v10 = vmul.f32 %v3733_v5, %v3731_v61 }
0x1ac6   :  { %v2312_v14 = vpack.c.bf16 %v2311_v10, %v2311_v10 }
0x1ac8   :  { %3561 = vmatmul.mubr.msk.bf16.vlgmr.msra.gmra.mxu0 %vm1682_vm4, %v2312_v14  ;;  %v2245_v14 = vadd.f32 %v4377_v45, %v4382_v52  ;;  %v1634_v52 = vld [vmem:[#allocation8 + $0xc] sm:$0xf] }
0x1ac9   :  { %3571 = vmatpush3.bf16.xpose.msra.mxu0 %v2415_v15  ;;  %3572 = vmatprep.mubr.msk.bf16.mxu0 %vm3893_vm0, %v3892_v0 }
0x1aca   :  { %3582 = vmatprep.subr.bf16.mxu0 %v3892_v0 }
0x1ad0   :  { %3573 = vmatmul.mubr.msk.bf16.vlgmr.msra.gmra.mxu0 %vm180_vm2, %v2408_v19 }
0x1ad1   :  { %3584 = vmatprep.mubr.msk.bf16.mxu0 %vm3893_vm0, %v3892_v0  ;;  %3583 = vmatpush3.bf16.msra.mxu0 %v2364_v22 }
0x1ad2   :  { %3594 = vmatprep.subr.bf16.mxu0 %v3892_v0 }
0x1b88   :  { %v2353_v24 = vpop.f32.mrf.mxu0 }
0x1b89   :  { %v2359_v26 = vpack.c.bf16 %v2353_v24, %v2353_v24 }
0x1b8a   :  { %v3562_v28 = vpop.f32.mrf.mxu0 }
0x1b8b   :  { %3567 = vmatmul.mubr.msk.bf16.vlgmr.msra.gmra.mxu1 %vm180_vm2, %v2359_v26 }
0x1b8c   :  { %v2356_v29 = vpop.f32.mrf.mxu0  ;;  %3578 = vmatprep.mubr.msk.bf16.mxu1 %vm3893_vm0, %v3892_v0 }
0x1b8e   :  { %v3563_v18 = vpop.f32.mrf.mxu0 }
0x1b90   :  { %v2451_v30 = vpop.f32.mrf.mxu0 }
0x1b91   :  { %v2457_v11 = vmul.f32 0.35355338, %v2451_v30 }
0x1b92   :  { %v3574_v31 = vpop.f32.mrf.mxu0 }
0x1b93   :  { %v2458_v32 = vsel %vm1682_vm4, %v2457_v11, -inf }
0x1b94   :  { %2459 = vmax.xlane.f32.xlu0 %v2458_v32  ;;  %v2454_v9 = vpop.f32.mrf.mxu0 }
0x1b96   :  { %v3575_v34 = vpop.f32.mrf.mxu0 }
0x1baa   :  { %2470 = vrot.lane.b32.xlu0 %v4279_v39, %s3898_s14 }
0x1bae   :  { %2561 = vrot.lane.b32.xlu0 %v4281_v43, %s3902_s25 }
0x1c1d   :  { %v2460_v3 = vpop.xlane.xlu0 %2459 }
0x1c1e   :  { %v2461_v35 = vsub.f32 %v2457_v11, %v2460_v3  ;;  %v2675_v11 = vsel %vm245_vm3, %v1634_v52, 0 }
0x1c20   :  { %v2462_v36 = vmul.f32 1.442695, %v2461_v35 }
0x1c21   :  { %v2471_v37 = vpop.permute.xlu0 %2470 }
0x1c22   :  { %3734 = vpow2.f32 %v2462_v36  ;;  %3577 = vmatpush3.bf16.msra.mxu1 %v2471_v37 }
0x1c23   :  { %3588 = vmatprep.subr.bf16.mxu1 %v3892_v0 }
0x1c25   :  { %v2562_v63 = vpop.permute.xlu0 %2561 }
0x1c2f   :  { %v3735_v38 = vpop.eup %3734 }
0x1c30   :  { %v2464_v40 = vsel %vm1682_vm4, %v3735_v38, 0.0 }
0x1c31   :  { %2465 = vadd.xlane.f32.xlu1 %v2464_v40 }
0x1c42   :  { %2563 = vrot.lane.b32.xlu1 %v4272_v33, %s3902_s25 }
0x1c4b   :  { %v2400_v42 = vpop.f32.mrf.mxu1 }
0x1c4c   :  { %v4418_v43 = vadd.f32 %v2400_v42, %v2049_v41 }
0x1c4d   :  { %v3568_v44 = vpop.f32.mrf.mxu1 }
0x1c4f   :  { %v2403_v48 = vpop.f32.mrf.mxu1 }
0x1c51   :  { %v3569_v49 = vpop.f32.mrf.mxu1 }
0x1cba   :  { %v2466_v50 = vpop.xlane.xlu1 %2465 }
0x1cbb   :  { %3736 = vrcp.f32 %v2466_v50 }
0x1cbe   :  { %v2564_v46 = vpop.permute.xlu1 %2563 }
0x1cbf   :  { %v2569_v55 = vsel %vm180_vm2, %v2564_v46, 0 }
0x1cc8   :  { %v3737_v51 = vpop.eup %3736 }
0x1cc9   :  { %v2468_v53 = vmul.f32 %v3737_v51, %v3735_v38 }
0x1ccb   :  { %v2469_v54 = vpack.c.bf16 %v2468_v53, %v2468_v53 }
0x1ccd   :  { %3579 = vmatmul.mubr.msk.bf16.vlgmr.msra.gmra.mxu1 %vm1682_vm4, %v2469_v54 }
0x1cce   :  { %3589 = vmatpush3.bf16.xpose.msra.mxu1 %v2569_v55  ;;  %3590 = vmatprep.mubr.msk.bf16.mxu1 %vm3893_vm0, %v3892_v0 }
0x1ccf   :  { %3600 = vmatprep.subr.bf16.mxu1 %v3892_v0 }
0x1cd5   :  { %3591 = vmatmul.mubr.msk.bf16.vlgmr.msra.gmra.mxu1 %vm180_vm2, %v2562_v63 }
0x1cd6   :  { %3602 = vmatprep.mubr.msk.bf16.mxu1 %vm3893_vm0, %v3892_v0  ;;  %3601 = vmatpush3.bf16.msra.mxu1 %v2675_v11 }
0x1cd7   :  { %3612 = vmatprep.subr.bf16.mxu1 %v3892_v0 }
0x1d8d   :  { %v2510_v6 = vpop.f32.mrf.mxu1 }
0x1d8e   :  { %v2516_v56 = vpack.c.bf16 %v2510_v6, %v2510_v6  ;;  %v4466_v6 = vld [vmem:[#allocation11] sm:$0xff] }
0x1d8f   :  { %v3580_v4 = vpop.f32.mrf.mxu1 }
0x1d90   :  { %3585 = vmatmul.mubr.msk.bf16.vlgmr.msra.gmra.mxu0 %vm180_vm2, %v2516_v56 }
0x1d91   :  { %v2513_v20 = vpop.f32.mrf.mxu1  ;;  %3596 = vmatprep.mubr.msk.bf16.mxu0 %vm3893_vm0, %v3892_v0 }
0x1d93   :  { %v3581_v25 = vpop.f32.mrf.mxu1 }
0x1d95   :  { %v2605_v57 = vpop.f32.mrf.mxu1 }
0x1d96   :  { %v2611_v58 = vmul.f32 0.35355338, %v2605_v57 }
0x1d97   :  { %v3592_v59 = vpop.f32.mrf.mxu1 }
0x1d98   :  { %v2612_v60 = vsel %vm1682_vm4, %v2611_v58, -inf }
0x1d99   :  { %2613 = vmax.xlane.f32.xlu1 %v2612_v60  ;;  %v2608_v61 = vpop.f32.mrf.mxu1 }
0x1d9b   :  { %v3593_v62 = vpop.f32.mrf.mxu1 }
0x1daa   :  { %2720 = vrot.lane.b32.xlu1 %v4279_v39, %s3902_s25 }
0x1dae   :  { %2718 = vrot.lane.b32.xlu1 %v4293_v17, %s3902_s25 }
0x1e22   :  { %v2614_v1 = vpop.xlane.xlu1 %2613 }
0x1e23   :  { %v2615_v2 = vsub.f32 %v2611_v58, %v2614_v1 }
0x1e25   :  { %v2616_v5 = vmul.f32 1.442695, %v2615_v2 }
0x1e26   :  { %v2721_v18 = vpop.permute.xlu1 %2720 }
0x1e27   :  { %3738 = vpow2.f32 %v2616_v5 }
0x1e2a   :  { %v2719_v45 = vpop.permute.xlu1 %2718 }
0x1e34   :  { %v3739_v10 = vpop.eup %3738 }
0x1e35   :  { %v2618_v13 = vsel %vm1682_vm4, %v3739_v10, 0.0 }
0x1e36   :  { %2619 = vadd.xlane.f32.xlu0 %v2618_v13 }
0x1e4c   :  { %2624 = vrot.lane.b32.xlu0 %v4272_v33, %s3901_s4  ;;  %v2726_v33 = vsel %vm180_vm2, %v2721_v18, 0 }
0x1e50   :  { %v2554_v15 = vpop.f32.mrf.mxu0 }
0x1e51   :  { %v4441_v19 = vadd.f32 %v2554_v15, %v2245_v14 }
0x1e52   :  { %v3586_v21 = vpop.f32.mrf.mxu0 }
0x1e54   :  { %v2557_v22 = vpop.f32.mrf.mxu0 }
0x1e56   :  { %v3587_v17 = vpop.f32.mrf.mxu0 }
0x1ebf   :  { %v2620_v24 = vpop.xlane.xlu0 %2619 }
0x1ec0   :  { %3740 = vrcp.f32 %v2620_v24 }
0x1ec3   :  { %v2625_v26 = vpop.permute.xlu0 %2624 }
0x1ec4   :  { %3595 = vmatpush3.bf16.msra.mxu0 %v2625_v26 }
0x1ec5   :  { %3606 = vmatprep.subr.bf16.mxu0 %v3892_v0 }
0x1ecd   :  { %v3741_v28 = vpop.eup %3740 }
0x1ece   :  { %v2622_v29 = vmul.f32 %v3741_v28, %v3739_v10 }
0x1ed0   :  { %v2623_v30 = vpack.c.bf16 %v2622_v29, %v2622_v29 }
0x1ed2   :  { %3597 = vmatmul.mubr.msk.bf16.vlgmr.msra.gmra.mxu0 %vm1682_vm4, %v2623_v30 }
0x1ed3   :  { %3607 = vmatpush3.bf16.xpose.msra.mxu0 %v2726_v33  ;;  %3608 = vmatprep.mubr.msk.bf16.mxu0 %vm3893_vm0, %v3892_v0 }
0x1ed4   :  { %3618 = vmatprep.subr.bf16.mxu0 %v3892_v0 }
0x1eda   :  { %3609 = vmatmul.mubr.msk.bf16.vlgmr.msra.gmra.mxu0 %vm180_vm2, %v2719_v45 }
0x1edb   :  { %3620 = vmatprep.mubr.msk.bf16.mxu0 %vm3893_vm0, %v3892_v0  ;;  %3619 = vmatpush3.bf16.msra.mxu0 %v2675_v11 }
0x1edc   :  { %3632 = vmatprep.subr.bf16.mxu0 %v3892_v0 }
0x1f92   :  { %v2664_v31 = vpop.f32.mrf.mxu0 }
0x1f93   :  { %v2670_v32 = vpack.c.bf16 %v2664_v31, %v2664_v31  ;;  %v3672_v31 = vld [vmem:[#allocation9 + $0x8] sm:$0xff]  }
0x1f94   :  { %v3598_v9 = vpop.f32.mrf.mxu0 }
0x1f95   :  { %3603 = vmatmul.mubr.msk.bf16.vlgmr.msra.gmra.mxu1 %vm180_vm2, %v2670_v32  ;;  %v3673_v32 = vld [vmem:[#allocation9] sm:$0xff]  }
0x1f96   :  { %v2667_v34 = vpop.f32.mrf.mxu0  ;;  %3614 = vmatprep.mubr.msk.bf16.mxu1 %vm3893_vm0, %v3892_v0 }
0x1f98   :  { %v3599_v3 = vpop.f32.mrf.mxu0 }
0x1f9a   :  { %v2762_v35 = vpop.f32.mrf.mxu0 }
0x1f9b   :  { %v2768_v36 = vmul.f32 0.35355338, %v2762_v35 }
0x1f9c   :  { %v3610_v37 = vpop.f32.mrf.mxu0 }
0x1f9d   :  { %v2769_v38 = vsel %vm1682_vm4, %v2768_v36, -inf }
0x1f9e   :  { %2770 = vmax.xlane.f32.xlu0 %v2769_v38  ;;  %v2765_v40 = vpop.f32.mrf.mxu0  ;;  %v2912_v38 = vsub.s32 6, %v4014_v7 }
0x1fa0   :  { %v3611_v41 = vpop.f32.mrf.mxu0 }
0x1fb4   :  { %2781 = vrot.lane.b32.xlu0 %v4279_v39, %s3901_s4  ;;  %v2878_v39 = vsub.s32 5, %v4014_v7 }
0x1fb6   :  { %v2879_v56 = vrot.slane %v4466_v6, %v2878_v39 }
0x2027   :  { %v2771_v42 = vpop.xlane.xlu0 %2770 }
0x2028   :  { %v2772_v44 = vsub.f32 %v2768_v36, %v2771_v42  ;;  %v2913_v42 = vrot.slane %v4466_v6, %v2912_v38 }
0x202a   :  { %v2773_v48 = vmul.f32 1.442695, %v2772_v44  ;;  %v2918_v44 = vsub.s32 7, %v4014_v7 }
0x202b   :  { %v2782_v49 = vpop.permute.xlu0 %2781 }
0x202c   :  { %3742 = vpow2.f32 %v2773_v48  ;;  %3613 = vmatpush3.bf16.msra.mxu1 %v2782_v49 }
0x202d   :  { %3624 = vmatprep.subr.bf16.mxu1 %v3892_v0 }
0x2039   :  { %v3743_v50 = vpop.eup %3742 }
0x203a   :  { %v2775_v51 = vsel %vm1682_vm4, %v3743_v50, 0.0 }
0x203b   :  { %2776 = vadd.xlane.f32.xlu1 %v2775_v51  ;;  %v2919_v51 = vrot.slane %v4466_v6, %v2918_v44  ;;  %v3677_v6 = vld [vmem:[%s4531_s7] sm:$0xff]  }
0x2055   :  { %v2711_v53 = vpop.f32.mrf.mxu1 }
0x2056   :  { %v2717_v46 = vadd.f32 %v2711_v53, %v4418_v43 }
0x2057   :  { %v3604_v54 = vpop.f32.mrf.mxu1 }
0x2058   :  { %2872 = vst.msk [vmem:[#allocation2] sm:$0xff] %vm127_vm1, %v2717_v46 }
0x2059   :  { %v2714_v55 = vpop.f32.mrf.mxu1 }
0x205a   :  { %v3675_v55 = vld [vmem:[%s4531_s7 + $0x10] sm:$0xff]  }
0x205b   :  { %v3605_v63 = vpop.f32.mrf.mxu1 }
0x205c   :  { %v3676_v63 = vld [vmem:[%s4531_s7 + $0x8] sm:$0xff]  }
0x205f   :  { %v2874_v4 = vld [vmem:[#allocation2] sm:$0xff] }
0x2060   :  { %v2880_v20 = vadd.f32 %v2879_v56, %v2874_v4 }
0x2062   :  { %v2882_v25 = vadd.f32 %v2880_v20, %v4263_v47 }
0x2064   :  { %v2884_v57 = vsel %vm127_vm1, %v2882_v25, 0.0 }
0x2065   :  { %2885 = vadd.xlane.f32.xlu1 %v2884_v57 }
0x20c4   :  { %v2777_v58 = vpop.xlane.xlu1 %2776 }
0x20c5   :  { %3744 = vrcp.f32 %v2777_v58 }
0x20d2   :  { %v3745_v43 = vpop.eup %3744 }
0x20d3   :  { %v2779_v59 = vmul.f32 %v3745_v43, %v3743_v50 }
0x20d5   :  { %v2780_v60 = vpack.c.bf16 %v2779_v59, %v2779_v59 }
0x20d7   :  { %3615 = vmatmul.mubr.msk.bf16.vlgmr.msra.gmra.mxu1 %vm1682_vm4, %v2780_v60 }
0x20d8   :  { %3628 = vmatprep.mubr.msk.bf16.mxu1 %vm3893_vm0, %v3892_v0  ;;  %3625 = vmatpush3.bf16.msra.mxu1 %v3672_v31 }
0x20d9   :  { %3626 = vmatprep.subr.bf16.mxu1 %v3892_v0 }
0x20dc   :  { %3627 = vmatpush3.bf16.msra.mxu1 %v3673_v32 }
0x20ee   :  { %v2886_v14 = vpop.xlane.xlu1 %2885 }
0x20ef   :  { %v2890_v22 = vmul.f32 0.03125, %v2886_v14 }
0x20f1   :  { %v2892_v24 = vsub.f32 %v2882_v25, %v2890_v22 }
0x20f3   :  { %v2894_v18 = vmul.f32 %v2892_v24, %v2892_v24 }
0x20f5   :  { %v2896_v30 = vsel %vm127_vm1, %v2894_v18, 0.0 }
0x2197   :  { %v2821_v61 = vpop.f32.mrf.mxu1 }
0x2198   :  { %v2827_v62 = vpack.c.bf16 %v2821_v61, %v2821_v61 }
0x2199   :  { %v3616_v1 = vpop.f32.mrf.mxu1 }
0x219a   :  { %3621 = vmatmul.mubr.msk.bf16.vlgmr.msra.gmra.mxu0 %vm180_vm2, %v2827_v62 }
0x219b   :  { %v2824_v2 = vpop.f32.mrf.mxu1  ;;  %3640 = vmatprep.mubr.msk.bf16.mxu0 %vm3893_vm0, %v3892_v0 }
0x219d   :  { %v3617_v47 = vpop.f32.mrf.mxu1 }
0x225a   :  { %v2865_v5 = vpop.f32.mrf.mxu0 }
0x225b   :  { %v2871_v10 = vadd.f32 %v2865_v5, %v4441_v19 }
0x225c   :  { %v3622_v13 = vpop.f32.mrf.mxu0 }
0x225d   :  { %2873 = vst.msk [vmem:[#allocation2 + $0x8] sm:$0xff] %vm127_vm1, %v2871_v10 }
0x225e   :  { %v2868_v15 = vpop.f32.mrf.mxu0 }
0x2260   :  { %v3623_v21 = vpop.f32.mrf.mxu0 }
0x2264   :  { %v2875_v17 = vld [vmem:[#allocation2 + $0x8] sm:$0xff] }
0x2265   :  { %v2881_v26 = vadd.f32 %v2879_v56, %v2875_v17  ;;  %v103_v56 = vld [vmem:[#allocation11 + $0x8] sm:$0xf] }
0x2266   :  { %v2930_v4 = vrot.slane %v103_v56, %v113_v8 }
0x2267   :  { %v2883_v28 = vadd.f32 %v2881_v26, %v4265_v27  ;;  %v3674_v27 = vld [vmem:[%s4531_s7 + $0x18] sm:$0xff]   ;;  %s3904_s7 = smov [#allocation12]  }
0x2268   :  { %3633 = vmatpush3.bf16.msra.mxu0 %v3674_v27  ;;  %v3102_v27 = vrot.slane %v103_v56, %v1474_v12  ;;  %s3118_s16 = sshll.u32 %s3904_s7, 4  ;;  %s3119_s16 = int_to_ptr.vmem [resolvable:$true] %s3118_s16 }
0x2269   :  { %v2887_v29 = vsel %vm127_vm1, %v2883_v28, 0.0  ;;  %3634 = vmatprep.subr.bf16.mxu0 %v3892_v0  ;;  %s3855_s17 = scalar_lea.vmem %s3119_s16, 256  ;;  %p3860_p12 = scmp.lt.s32.totalorder %s3119_s16, %s3119_s16 }
0x226a   :  { %2888 = vadd.xlane.f32.xlu1 %v2887_v29  ;;  %p3856_p11 = scmp.ne.s32.totalorder %s3119_s16, %s3855_s17  ;;  %p3861_p13 = scmp.lt.s32.totalorder %s3855_s17, %s3855_s17 }
0x226c   :  { %3635 = vmatpush3.bf16.msra.mxu0 %v3675_v55  ;;  %p3862_p0 = por %p3861_p13, %p3860_p12 }
0x226d   :  { %3636 = vmatprep.subr.bf16.mxu0 %v3892_v0 }
0x226e   :  { %2897 = vadd.xlane.f32.xlu1 %v2896_v30  ;;  %p3863_p1 = pnand %p3862_p0, %p3856_p11 }
0x2270   :  { %3637 = vmatpush3.bf16.msra.mxu0 %v3676_v63 }
0x2271   :  { %3638 = vmatprep.subr.bf16.mxu0 %v3892_v0  ;;  %v3001_v0 = vrot.slane %v103_v56, %v1439_v23 }
0x2274   :  { %3639 = vmatpush3.bf16.msra.mxu0 %v3677_v6 }
0x22f3   :  { %v2889_v19 = vpop.xlane.xlu1 %2888 }
0x22f4   :  { %v2891_v33 = vmul.f32 0.03125, %v2889_v19 }
0x22f6   :  { %v2893_v45 = vsub.f32 %v2883_v28, %v2891_v33 }
0x22f7   :  { %v2898_v9 = vpop.xlane.xlu1 %2897 }
0x22f8   :  { %v2895_v52 = vmul.f32 %v2893_v45, %v2893_v45  ;;  %v2902_v34 = vmul.f32 0.03125, %v2898_v9 }
0x22fa   :  { %v2899_v11 = vsel %vm127_vm1, %v2895_v52, 0.0  ;;  %v2904_v3 = vadd.f32 1e-05, %v2902_v34 }
0x22fb   :  { %2900 = vadd.xlane.f32.xlu1 %v2899_v11 }
0x22fc   :  { %3746 = vrsqrt.f32 %v2904_v3  ;;  %v3108_v3 = vrot.slane %v103_v56, %v1480_v16 }
0x2309   :  { %v3747_v40 = vpop.eup %3746 }
0x230a   :  { %v2908_v41 = vmul.f32 %v3747_v40, %v2892_v24 }
0x230c   :  { %v2914_v50 = vmul.f32 %v2913_v42, %v2908_v41 }
0x230e   :  { %v2920_v46 = vadd.f32 %v2919_v51, %v2914_v50 }
0x2384   :  { %v2901_v35 = vpop.xlane.xlu1 %2900 }
0x2385   :  { %v2903_v36 = vmul.f32 0.03125, %v2901_v35 }
0x2387   :  { %v2905_v37 = vadd.f32 1e-05, %v2903_v36 }
0x2389   :  { %3748 = vrsqrt.f32 %v2905_v37 }
0x2396   :  { %v3749_v48 = vpop.eup %3748 }
0x2397   :  { %v2909_v49 = vmul.f32 %v3749_v48, %v2893_v45 }
0x2399   :  { %v2915_v53 = vmul.f32 %v2913_v42, %v2909_v49 }
0x239b   :  { %v2921_v54 = vadd.f32 %v2919_v51, %v2915_v53 }
0x239d   :  { %v2922_v39 = vpack.c.bf16 %v2921_v54, %v2920_v46 }
0x239f   :  { %3629 = vmatmul.mubr.msk.bf16.vlgmr.msra.gmra.mxu1 %vm127_vm1, %v2922_v39 }
0x245f   :  { %v2980_v20 = vpop.f32.mrf.mxu1 }
0x2460   :  { %v2981_v57 = vadd.f32 %v2980_v20, %v2930_v4 }
0x2461   :  { %v3630_v25 = vpop.f32.mrf.mxu1 }
0x2462   :  { %v2987_v60 = vmax.f32 %v2981_v57, 0.0 }
0x2463   :  { %v2983_v58 = vpop.f32.mrf.mxu1 }
0x2464   :  { %v2984_v43 = vadd.f32 %v2983_v58, %v2930_v4 }
0x2465   :  { %v3631_v59 = vpop.f32.mrf.mxu1 }
0x2466   :  { %v2988_v61 = vmax.f32 %v2984_v43, 0.0 }
0x2468   :  { %v2989_v62 = vpack.c.bf16 %v2988_v61, %v2987_v60 }
0x246a   :  { %3641 = vmatmul.mubr.msk.bf16.vlgmr.msra.gmra.mxu0 %vm3026_vm5, %v2989_v62 }
0x252a   :  { %v3064_v1 = vpop.f32.mrf.mxu0 }
0x252b   :  { %v3065_v2 = vadd.f32 %v3064_v1, %v3001_v0 }
0x252c   :  { %v3642_v47 = vpop.f32.mrf.mxu0 }
0x252d   :  { %v3071_v5 = vadd.f32 %v3065_v2, %v2920_v46 }
0x252e   :  { %v3067_v10 = vpop.f32.mrf.mxu0 }
0x252f   :  { %v3068_v8 = vadd.f32 %v3067_v10, %v3001_v0  ;;  %v3073_v13 = vsel %vm127_vm1, %v3071_v5, 0.0 }
0x2530   :  { %3074 = vadd.xlane.f32.xlu1 %v3073_v13  ;;  %v3643_v14 = vpop.f32.mrf.mxu0 }
0x2531   :  { %v3072_v15 = vadd.f32 %v3068_v8, %v2921_v54 }
0x2533   :  { %v3076_v21 = vsel %vm127_vm1, %v3072_v15, 0.0 }
0x2534   :  { %3077 = vadd.xlane.f32.xlu0 %v3076_v21 }
0x25b9   :  { %v3075_v22 = vpop.xlane.xlu1 %3074 }
0x25ba   :  { %v3079_v17 = vmul.f32 0.03125, %v3075_v22 }
0x25bc   :  { %v3081_v24 = vsub.f32 %v3071_v5, %v3079_v17 }
0x25bd   :  { %v3078_v26 = vpop.xlane.xlu0 %3077 }
0x25be   :  { %v3080_v28 = vmul.f32 0.03125, %v3078_v26  ;;  %v3083_v23 = vmul.f32 %v3081_v24, %v3081_v24 }
0x25c0   :  { %v3082_v29 = vsub.f32 %v3072_v15, %v3080_v28  ;;  %v3085_v18 = vsel %vm127_vm1, %v3083_v23, 0.0 }
0x25c1   :  { %3086 = vadd.xlane.f32.xlu1 %v3085_v18 }
0x25c2   :  { %v3084_v30 = vmul.f32 %v3082_v29, %v3082_v29 }
0x25c4   :  { %v3088_v19 = vsel %vm127_vm1, %v3084_v30, 0.0 }
0x25c5   :  { %3089 = vadd.xlane.f32.xlu1 %v3088_v19 }
0x264a   :  { %v3087_v33 = vpop.xlane.xlu1 %3086 }
0x264b   :  { %v3091_v45 = vmul.f32 0.03125, %v3087_v33 }
0x264d   :  { %v3093_v52 = vadd.f32 1e-05, %v3091_v45 }
0x264e   :  { %v3090_v11 = vpop.xlane.xlu1 %3089 }
0x264f   :  { %3750 = vrsqrt.f32 %v3093_v52  ;;  %v3092_v31 = vmul.f32 0.03125, %v3090_v11 }
0x2651   :  { %v3094_v32 = vadd.f32 1e-05, %v3092_v31 }
0x2653   :  { %3752 = vrsqrt.f32 %v3094_v32 }
0x265c   :  { %v3751_v9 = vpop.eup %3750 }
0x265d   :  { %v3097_v34 = vmul.f32 %v3751_v9, %v3081_v24 }
0x265f   :  { %v3103_v35 = vmul.f32 %v3102_v27, %v3097_v34 }
0x2660   :  { %v3753_v36 = vpop.eup %3752 }
0x2661   :  { %v3098_v37 = vmul.f32 %v3753_v36, %v3082_v29  ;;  %v3109_v38 = vadd.f32 %v3108_v3, %v3103_v35 }
0x2663   :  { %v3104_v40 = vmul.f32 %v3102_v27, %v3098_v37  ;;  %3111 = vst.msk [vmem:[#allocation12] sm:$0xff] %vm127_vm1, %v3109_v38 }
0x2665   :  { %v3110_v41 = vadd.f32 %v3108_v3, %v3104_v40 }
0x2667   :  { %3112 = vst.msk [vmem:[#allocation12 + $0x8] sm:$0xff] %vm127_vm1, %v3110_v41 }
0x2668   :  { %3866 = shalt.err (!%p3863_p1)
}
0x2669   :  { %3124 = dma.vmem_to_hbm [thread:$0]  %s3119_s16, 256, %s4533_s9, [#allocation5], %s3890_s3, %s3890_s3, %s3891_s11  }
0x266a   :  { %3881 = dma.done.wait [#allocation5], 256  }
0x266b   :  { %3882 = vsyncadd [#allocation5], 4294967040 }
0x266c   :  { %3128 = vsyncpa [#allocation4], 1 }
0x266d   :  { %3129 = vsyncpa [#allocation7], 1 }
0x266e   :  { %3130 = vsyncpa [#allocation10], 1 }
0x266f   :  { %3131 = vsyncpa [#allocation5], 1 }

</bundles_post_ra>
